<compile_context>
chip_gen: v7x
topology: tpu7x:2x2x1
jax: 0.10.0
libtpu: 0.0.40
codegen_flags: <defaults>
</compile_context>

<pallas_src>
import jax
import jax.numpy as jnp
from jax.experimental import pallas as pl
from jax.experimental.pallas import tpu as pltpu

CHANNELS = 3
IMG_DIM = 16        # original: 128 (scaled down for the self-test)
LATENT_DIM = 32     # original: 256 (scaled down)
HALF_DEPTH = 2
N_BATCH = 2

BN_EPS = 1e-5
LRELU_SLOPE = 0.01

LANE = 128
K_ALIGN = 256       # contraction padded to 256-multiples (v6e/v7x MXU depth)
TP_MAX = 512        # pass-1 row tile
TC_MAX = 512        # output-column tile
TP2_CANDS = (4096, 2048, 1024, 512, 256, 128)   # pass-2 row tiles (mem-bound pass)


def _round_up(x, m):
    return (x + m - 1) // m * m


def _vmem_limit_bytes():
    """Per-generation VMEM limit: ~3/4 of physical, capped (v7x has only 64 MiB/TC)."""
    try:
        cap = int(pltpu.get_tpu_info().vmem_capacity_bytes)
    except Exception:
        cap = 64 * 1024 * 1024
    return min(cap * 3 // 4, 100 * 1024 * 1024)


_VMEM_LIMIT = _vmem_limit_bytes()
_TILE_BUDGET = int(_VMEM_LIMIT * 0.7)   # headroom for Mosaic internals


def _pick_row_tiling(p, cap=TP_MAX):
    """Row tile (multiple of 8, <= cap) and padded row count."""
    if p >= cap:
        return cap, _round_up(p, cap)
    p_pad = _round_up(p, 8)
    return p_pad, p_pad


def _pick_col_tiling(c_cols):
    """Column tile (lane-dense) and padded column count."""
    c_pad = _round_up(c_cols, LANE)
    if c_pad <= TC_MAX:
        return c_pad, c_pad
    return TC_MAX, _round_up(c_pad, TC_MAX)


def _pick_k_tile(k_pad, tp, tc, budget):
    """Single K step if the double-buffered working set fits, else a 256-multiple."""
    def fits(tk):
        x_blk = tp * tk * 2          # bf16
        w_blk = tk * tc * 2          # bf16
        y_blk = tp * tc * 2          # bf16
        st_blk = 2 * tc * 4          # f32 stats
        acc = tp * tc * 4            # f32 scratch
        return 2 * (x_blk + w_blk + y_blk + st_blk) + acc <= budget
    if fits(k_pad):
        return k_pad
    for tk in (4096, 2048, 1024, 512, 256):
        if k_pad % tk == 0 and fits(tk):
            return tk
    return 256                       # k_pad is always a 256-multiple


def _pick_row_tiling2(p_pad, tp1, tc, budget):
    """Pass-2 row tile: as large as fits (pure mem-bound pass)."""
    for tp2 in TP2_CANDS:
        if p_pad % tp2 == 0 and 2 * (2 * tp2 * tc * 2 + 4 * tc * 4) <= budget:
            return tp2
    return tp1


# ----------------------------- Pallas kernels --------------------------------

def _matmul_stats_kernel(x_ref, w_ref, y_ref, stats_ref, acc_ref):
    """Pass 1: tiled matmul (f32 accumulator) + packed per-column partial BN stats."""
    k = pl.program_id(2)

    @pl.when(k == 0)
    def _():
        acc_ref[...] = jnp.zeros_like(acc_ref)

    acc_ref[...] += jnp.dot(x_ref[...], w_ref[...],
                            preferred_element_type=jnp.float32)

    @pl.when(k == pl.num_programs(2) - 1)
    def _():
        tp, tc = acc_ref.shape
        chunk = min(tp, 128)
        s = jnp.zeros((1, tc), jnp.float32)
        ss = jnp.zeros((1, tc), jnp.float32)
        # Chunked epilogue: cast/store + reductions in <=128-row slices so the whole
        # (tp, tc) f32 tile is never bound at once (keeps vreg pressure bounded).
        off = 0
        while off < tp:
            cs = min(chunk, tp - off)
            blk = acc_ref[off:off + cs, :]
            y_ref[off:off + cs, :] = blk.astype(y_ref.dtype)
            s = s + jnp.sum(blk, axis=0, keepdims=True)
            ss = ss + jnp.sum(blk * blk, axis=0, keepdims=True)
            off += cs
        stats_ref[...] = jnp.concatenate([s, ss], axis=0).reshape(1, 2, tc)


def _bn_lrelu_kernel(y_ref, scale_ref, shift_ref, o_ref):
    """Pass 2: per-column affine (folded train-mode BN) + LeakyReLU, bf16 out."""
    z = y_ref[...].astype(jnp.float32) * scale_ref[...] + shift_ref[...]
    z = jnp.where(z >= 0.0, z, LRELU_SLOPE * z)
    o_ref[...] = z.astype(o_ref.dtype)


# ------------------------- fused matmul + BN + LReLU --------------------------

def fused_matmul_bn_lrelu(x, layer):
    """x: (P, K) bf16 (unpadded). Columns of W are `reps` repeats of the channel set
    (group-major). Returns (P, reps*c_out) bf16 after BatchNorm(train)+LeakyReLU."""
    wmat = layer["wmat"]                              # (K_pad, C_pad) bf16
    c_out, reps, c_cols = layer["c_out"], layer["reps"], layer["c_cols"]
    gamma, beta = layer["gamma"], layer["beta"]       # (c_out,) f32

    p, k = x.shape
    k_pad, c_pad = wmat.shape
    tc = layer["tc"]
    tp, p_pad = _pick_row_tiling(p)
    tk = _pick_k_tile(k_pad, tp, tc, _TILE_BUDGET)
    n_p, n_c, n_k = p_pad // tp, c_pad // tc, k_pad // tk

    # Zero-pad rows / contraction dim; padded rows contribute 0 to the BN sums
    # (no bias before BN), so statistics stay exact.
    xp = x if (p_pad == p and k_pad == k) else jnp.pad(x, ((0, p_pad - p), (0, k_pad - k)))

    y, stats = pl.pallas_call(
        _matmul_stats_kernel,
        out_shape=(
            jax.ShapeDtypeStruct((p_pad, c_pad), jnp.bfloat16),     # bf16 handoff
            jax.ShapeDtypeStruct((n_p, 2, c_pad), jnp.float32),     # packed sum/sumsq
        ),
        grid_spec=pltpu.PrefetchScalarGridSpec(
            num_scalar_prefetch=0,
            grid=(n_p, n_c, n_k),                                   # K reduction last
            in_specs=[
                pl.BlockSpec((tp, tk), lambda i, c, kk: (i, kk)),
                pl.BlockSpec((tk, tc), lambda i, c, kk: (kk, c)),
            ],
            out_specs=[
                pl.BlockSpec((tp, tc), lambda i, c, kk: (i, c)),
                pl.BlockSpec((1, 2, tc), lambda i, c, kk: (i, 0, c)),
            ],
            scratch_shapes=[pltpu.VMEM((tp, tc), jnp.float32)],
        ),
        compiler_params=pltpu.CompilerParams(
            dimension_semantics=("parallel", "parallel", "arbitrary"),
            vmem_limit_bytes=_VMEM_LIMIT,
        ),
    )(xp, wmat)

    # Tiny per-channel epilogue (C-length vector math only).
    col_sum = jnp.sum(stats[:, 0, :], axis=0)[:c_cols]
    col_ssq = jnp.sum(stats[:, 1, :], axis=0)[:c_cols]
    ch_sum = col_sum.reshape(reps, c_out).sum(axis=0)
    ch_ssq = col_ssq.reshape(reps, c_out).sum(axis=0)
    cnt = jnp.float32(p * reps)
    mean = ch_sum / cnt
    # one-pass biased variance (torch BN train); max() guards cancellation.
    var = jnp.maximum(ch_ssq / cnt - mean * mean, 0.0)
    scale = gamma * jax.lax.rsqrt(var + BN_EPS)
    shift = beta - mean * scale
    scale_cols = jnp.pad(jnp.tile(scale, reps), (0, c_pad - c_cols)).reshape(1, c_pad)
    shift_cols = jnp.pad(jnp.tile(shift, reps), (0, c_pad - c_cols)).reshape(1, c_pad)

    tp2 = _pick_row_tiling2(p_pad, tp, tc, _TILE_BUDGET)
    out = pl.pallas_call(
        _bn_lrelu_kernel,
        out_shape=jax.ShapeDtypeStruct((p_pad, c_pad), jnp.bfloat16),
        grid_spec=pltpu.PrefetchScalarGridSpec(
            num_scalar_prefetch=0,
            grid=(p_pad // tp2, n_c),
            in_specs=[
                pl.BlockSpec((tp2, tc), lambda i, c: (i, c)),
                pl.BlockSpec((1, tc), lambda i, c: (0, c)),
                pl.BlockSpec((1, tc), lambda i, c: (0, c)),
            ],
            out_specs=pl.BlockSpec((tp2, tc), lambda i, c: (i, c)),
        ),
        compiler_params=pltpu.CompilerParams(
            dimension_semantics=("parallel", "parallel"),
            vmem_limit_bytes=_VMEM_LIMIT,
        ),
    )(y, scale_cols, shift_cols)

    return out[:p, :c_cols]


# ------------------------------- JAX glue ------------------------------------

def _im2col(x, k, stride, pad):
    n, h, w, c = x.shape
    xp = jnp.pad(x, ((0, 0), (pad, pad), (pad, pad), (0, 0)))
    ho = (h + 2 * pad - k) // stride + 1
    wo = (w + 2 * pad - k) // stride + 1
    taps = [xp[:, i:i + stride * ho:stride, j:j + stride * wo:stride, :]
            for i in range(k) for j in range(k)]
    cols = jnp.stack(taps, axis=3).reshape(n * ho * wo, k * k * c)   # (P, k*k*C)
    return cols, (n, ho, wo)


def _patches_2x2(x):
    """2x2 patches (stride 1, pad bottom/right by 1) for the sub-pixel deconv."""
    n, h, w, c = x.shape
    xp = jnp.pad(x, ((0, 0), (0, 1), (0, 1), (0, 0)))
    taps = [xp[:, pi:pi + h, pj:pj + w, :] for pi in (0, 1) for pj in (0, 1)]
    return jnp.stack(taps, axis=3).reshape(n * h * w, 4 * c), (n, h, w)


def conv_bn_lrelu(x, layer, k, stride, pad):
    cols, (n, ho, wo) = _im2col(x, k, stride, pad)
    y = fused_matmul_bn_lrelu(cols, layer)
    return y.reshape(n, ho, wo, layer["c_out"])


def deconv_head_bn_lrelu(x, layer, k):
    """ConvTranspose2d on a 1x1 spatial input == dense matmul + reshape to (k, k, C)."""
    n, h, w, c = x.shape
    assert h == 1 and w == 1
    y = fused_matmul_bn_lrelu(x.reshape(n, c), layer)        # (n, k*k*c_out)
    return y.reshape(n, k, k, layer["c_out"])


def deconv_s2_bn_lrelu(x, layer):
    """stride-2 3x3 ConvTranspose (pad=1, out_pad=1) via sub-pixel decomposition."""
    cols, (n, h, w) = _patches_2x2(x)
    y = fused_matmul_bn_lrelu(cols, layer)                   # (n*h*w, 4*c_out)
    co = layer["c_out"]
    y = y.reshape(n, h, w, 2, 2, co).transpose(0, 1, 3, 2, 4, 5)
    return y.reshape(n, 2 * h, 2 * w, co)                    # pixel-shuffle interleave


# -------------------------- parameter construction ---------------------------

def _make_layer(wmat, c_out, reps):
    """Pad + bf16-cast the (K, reps*c_out) matmul weight once; fresh-BN gamma/beta."""
    k, c_cols = wmat.shape
    assert c_cols == reps * c_out
    tc, c_pad = _pick_col_tiling(c_cols)
    k_pad = _round_up(k, K_ALIGN)
    wmat_pad = jnp.pad(wmat, ((0, k_pad - k), (0, c_pad - c_cols))).astype(jnp.bfloat16)
    return {"wmat": wmat_pad, "c_out": c_out, "reps": reps, "c_cols": c_cols, "tc": tc,
            "gamma": jnp.ones((c_out,), jnp.float32),        # fresh BN: gamma=1
            "beta": jnp.zeros((c_out,), jnp.float32)}        # beta=0


def _conv_layer(w_oihw):
    co, ci, kh, kw = w_oihw.shape
    wmat = jnp.transpose(w_oihw, (2, 3, 1, 0)).reshape(kh * kw * ci, co)
    return _make_layer(wmat, co, 1)


def _deconv_head_layer(wt):
    """ConvTranspose weight (C_in, C_out, k, k) -> dense (C_in, k*k*C_out)."""
    ci, co, kh, kw = wt.shape
    wmat = jnp.transpose(wt, (0, 2, 3, 1)).reshape(ci, kh * kw * co)
    return _make_layer(wmat, co, kh * kw)


def _deconv_s2_layer(wt):
    """ConvTranspose (C_in, C_out, 3, 3), stride 2, pad 1, out_pad 1 -> combined
    sub-pixel weight (4*C_in, 4*C_out): rows = 2x2 patch taps, cols = output phases."""
    ci, co, _, _ = wt.shape

    def wf(di, dj):                              # flipped kernel of equivalent fwd conv
        return wt[:, :, 2 - di, 2 - dj]          # (ci, co)

    z = jnp.zeros((ci, co), wt.dtype)
    #         g=0 (r0,s0)  g=1 (r0,s1)  g=2 (r1,s0)  g=3 (r1,s1)
    blocks = [
        [wf(1, 1),    wf(1, 0),    wf(0, 1),    wf(0, 0)],   # tap x[i,   j  ]
        [z,           wf(1, 2),    z,           wf(0, 2)],   # tap x[i,   j+1]
        [z,           z,           wf(2, 1),    wf(2, 0)],   # tap x[i+1, j  ]
        [z,           z,           z,           wf(2, 2)],   # tap x[i+1, j+1]
    ]
    wmat = jnp.concatenate([jnp.concatenate(row, axis=1) for row in blocks], axis=0)
    return _make_layer(wmat, co, 4)


def build_autoencoder_params(key, half_depth):
    keys = iter(jax.random.split(key, 64))
    first_dim = IMG_DIM >> 1
    dims = [first_dim << i for i in range(half_depth)]
    latent_kernel = IMG_DIM >> half_depth

    # encoder: (layer, kernel, stride, pad)   -- bias omitted (cancelled by BN-train)
    enc = []
    in_c = CHANNELS
    for d in dims:
        w = 0.1 * jax.random.normal(next(keys), (d, in_c, 3, 3), jnp.float32)
        enc.append((_conv_layer(w), 3, 2, 1))
        in_c = d
    w = 0.1 * jax.random.normal(next(keys),
                                (LATENT_DIM, in_c, latent_kernel, latent_kernel),
                                jnp.float32)
    enc.append((_conv_layer(w), latent_kernel, 1, 0))

    # decoder
    dims_rev = list(reversed(dims))
    wt = 0.1 * jax.random.normal(next(keys),
                                 (LATENT_DIM, dims_rev[0], latent_kernel, latent_kernel),
                                 jnp.float32)
    dec = [("head", _deconv_head_layer(wt), latent_kernel)]
    in_c = dims_rev[0]
    for d in dims_rev[1:] + [CHANNELS]:
        wt = 0.1 * jax.random.normal(next(keys), (in_c, d, 3, 3), jnp.float32)
        dec.append(("s2", _deconv_s2_layer(wt), 3))
        in_c = d
    return enc, dec


def autoencoder_forward(x_nchw, enc, dec):
    x = jnp.transpose(x_nchw, (0, 2, 3, 1)).astype(jnp.bfloat16)   # NCHW->NHWC, bf16
    for layer, k, s, p in enc:
        x = conv_bn_lrelu(x, layer, k, s, p)
    for kind, layer, k in dec:
        if kind == "head":
            x = deconv_head_bn_lrelu(x, layer, k)
        else:
            x = deconv_s2_bn_lrelu(x, layer)
    return jnp.transpose(x, (0, 3, 1, 2)).astype(jnp.float32)      # NHWC->NCHW, f32


# ---------------------------------- main --------------------------------------

if __name__ == "__main__":
    key = jax.random.PRNGKey(0)
    k_param, k_x = jax.random.split(key)

    enc, dec = build_autoencoder_params(k_param, HALF_DEPTH)
    x = jax.random.normal(k_x, (N_BATCH, CHANNELS, IMG_DIM, IMG_DIM), jnp.float32)

    fwd = jax.jit(lambda inp: autoencoder_forward(inp, enc, dec))
    out = jax.block_until_ready(fwd(x))

    assert out.shape == (N_BATCH, CHANNELS, IMG_DIM, IMG_DIM), out.shape
    assert out.dtype == jnp.float32
    assert bool(jnp.all(jnp.isfinite(out)))
    print("KERNEL_OK")
</pallas_src>

<mosaic_0001>
module attributes {stable_mosaic.version = 11 : i64} {
  func.func @_bn_lrelu_kernel(%arg0: i32, %arg1: i32, %arg2: memref<128x128xbf16, #tpu.memory_space<vmem>>, %arg3: memref<1x128xf32, #tpu.memory_space<vmem>>, %arg4: memref<1x128xf32, #tpu.memory_space<vmem>>, %arg5: memref<128x128xbf16, #tpu.memory_space<vmem>>) attributes {dimension_semantics = [#tpu.dimension_semantics<parallel>, #tpu.dimension_semantics<parallel>], iteration_bounds = array<i64: 1, 1>, scalar_prefetch = 0 : i64, scratch_operands = 0 : i64, tpu.core_type = #tpu.core_type<tc>, window_params = [{transform_indices = @transform_0, window_bounds = array<i64: 128, 128>}, {transform_indices = @transform_1, window_bounds = array<i64: 1, 128>}, {transform_indices = @transform_2, window_bounds = array<i64: 1, 128>}, {transform_indices = @transform_3, window_bounds = array<i64: 128, 128>}]} {
    %c0 = arith.constant 0 : index
    %c0_0 = arith.constant 0 : index
    %0 = vector.load %arg2[%c0, %c0_0] : memref<128x128xbf16, #tpu.memory_space<vmem>>, vector<128x128xbf16>
    %1 = arith.extf %0 : vector<128x128xbf16> to vector<128x128xf32>
    %c0_1 = arith.constant 0 : index
    %c0_2 = arith.constant 0 : index
    %2 = vector.load %arg3[%c0_1, %c0_2] : memref<1x128xf32, #tpu.memory_space<vmem>>, vector<1x128xf32>
    %3 = vector.broadcast %2 : vector<1x128xf32> to vector<128x128xf32>
    %4 = arith.mulf %1, %3 : vector<128x128xf32>
    %c0_3 = arith.constant 0 : index
    %c0_4 = arith.constant 0 : index
    %5 = vector.load %arg4[%c0_3, %c0_4] : memref<1x128xf32, #tpu.memory_space<vmem>>, vector<1x128xf32>
    %6 = vector.broadcast %5 : vector<1x128xf32> to vector<128x128xf32>
    %7 = arith.addf %4, %6 : vector<128x128xf32>
    %cst = arith.constant 0.000000e+00 : f32
    %8 = vector.broadcast %cst : f32 to vector<128x128xf32>
    %9 = arith.cmpf oge, %7, %8 : vector<128x128xf32>
    %cst_5 = arith.constant 0.00999999977 : f32
    %10 = vector.broadcast %cst_5 : f32 to vector<128x128xf32>
    %11 = arith.mulf %10, %7 : vector<128x128xf32>
    %12 = arith.select %9, %7, %11 : vector<128x128xi1>, vector<128x128xf32>
    %13 = arith.truncf %12 : vector<128x128xf32> to vector<128x128xbf16>
    %c0_6 = arith.constant 0 : index
    %c0_7 = arith.constant 0 : index
    %14 = vector.load %arg5[%c0_6, %c0_7] : memref<128x128xbf16, #tpu.memory_space<vmem>>, vector<128x128xbf16>
    tpu.vector_store %arg5[%c0_6, %c0_7], %13 {strides = array<i32>} : memref<128x128xbf16, #tpu.memory_space<vmem>>, vector<128x128xbf16>,
    return
  }
  func.func @transform_0(%arg0: i32, %arg1: i32) -> (i32, i32) {
    %c0_i32 = arith.constant 0 : i32
    return %arg0, %arg1 : i32, i32
  }
  func.func @transform_1(%arg0: i32, %arg1: i32) -> (i32, i32) {
    %c0_i32 = arith.constant 0 : i32
    %c0_i32_0 = arith.constant 0 : i32
    return %c0_i32, %arg1 : i32, i32
  }
  func.func @transform_2(%arg0: i32, %arg1: i32) -> (i32, i32) {
    %c0_i32 = arith.constant 0 : i32
    %c0_i32_0 = arith.constant 0 : i32
    return %c0_i32, %arg1 : i32, i32
  }
  func.func @transform_3(%arg0: i32, %arg1: i32) -> (i32, i32) {
    %c0_i32 = arith.constant 0 : i32
    return %arg0, %arg1 : i32, i32
  }
}

module attributes {stable_mosaic.version = 11 : i64} {
  func.func @_matmul_stats_kernel(%arg0: i32, %arg1: i32, %arg2: i32, %arg3: memref<128x256xbf16, #tpu.memory_space<vmem>>, %arg4: memref<256x128xbf16, #tpu.memory_space<vmem>>, %arg5: memref<128x128xbf16, #tpu.memory_space<vmem>>, %arg6: memref<1x2x128xf32, #tpu.memory_space<vmem>>, %arg7: memref<128x128xf32, #tpu.memory_space<vmem>>) attributes {dimension_semantics = [#tpu.dimension_semantics<parallel>, #tpu.dimension_semantics<parallel>, #tpu.dimension_semantics<arbitrary>], iteration_bounds = array<i64: 1, 1, 1>, scalar_prefetch = 0 : i64, scratch_operands = 1 : i64, tpu.core_type = #tpu.core_type<tc>, window_params = [{transform_indices = @transform_0, window_bounds = array<i64: 128, 256>}, {transform_indices = @transform_1, window_bounds = array<i64: 256, 128>}, {transform_indices = @transform_2, window_bounds = array<i64: 128, 128>}, {transform_indices = @transform_3, window_bounds = array<i64: 1, 2, 128>}]} {
    %c0_i32 = arith.constant 0 : i32
    %0 = arith.cmpi eq, %arg2, %c0_i32 : i32
    %1 = arith.extui %0 : i1 to i32
    %c0_i32_0 = arith.constant 0 : i32
    %2 = arith.cmpi ne, %1, %c0_i32_0 : i32
    scf.if %2 {
      %cst_10 = arith.constant 0.000000e+00 : f32
      %12 = vector.broadcast %cst_10 : f32 to vector<128x128xf32>
      %c0_11 = arith.constant 0 : index
      %c0_12 = arith.constant 0 : index
      %13 = vector.load %arg7[%c0_11, %c0_12] : memref<128x128xf32, #tpu.memory_space<vmem>>, vector<128x128xf32>
      tpu.vector_store %arg7[%c0_11, %c0_12], %12 {strides = array<i32>} : memref<128x128xf32, #tpu.memory_space<vmem>>, vector<128x128xf32>,
    } else {
    }
    %c0 = arith.constant 0 : index
    %c0_1 = arith.constant 0 : index
    %3 = vector.load %arg7[%c0, %c0_1] : memref<128x128xf32, #tpu.memory_space<vmem>>, vector<128x128xf32>
    %c0_2 = arith.constant 0 : index
    %c0_3 = arith.constant 0 : index
    %4 = vector.load %arg3[%c0_2, %c0_3] : memref<128x256xbf16, #tpu.memory_space<vmem>>, vector<128x256xbf16>
    %c0_4 = arith.constant 0 : index
    %c0_5 = arith.constant 0 : index
    %5 = vector.load %arg4[%c0_4, %c0_5] : memref<256x128xbf16, #tpu.memory_space<vmem>>, vector<256x128xbf16>
    %cst = arith.constant dense<0.000000e+00> : vector<128x128xf32>
    %6 = tpu.matmul %4, %5, %cst {dimension_numbers = #tpu.dot_dimension_numbers<[1], [0], [0], [1], [0, 0, 1, 1], [], []>} : vector<128x256xbf16>, vector<256x128xbf16>, vector<128x128xf32> -> vector<128x128xf32>
    %7 = arith.addf %3, %6 : vector<128x128xf32>
    %c0_6 = arith.constant 0 : index
    %c0_7 = arith.constant 0 : index
    %8 = vector.load %arg7[%c0_6, %c0_7] : memref<128x128xf32, #tpu.memory_space<vmem>>, vector<128x128xf32>
    tpu.vector_store %arg7[%c0_6, %c0_7], %7 {strides = array<i32>} : memref<128x128xf32, #tpu.memory_space<vmem>>, vector<128x128xf32>,
    %c0_i32_8 = arith.constant 0 : i32
    %9 = arith.cmpi eq, %arg2, %c0_i32_8 : i32
    %10 = arith.extui %9 : i1 to i32
    %c0_i32_9 = arith.constant 0 : i32
    %11 = arith.cmpi ne, %10, %c0_i32_9 : i32
    scf.if %11 {
      %cst_10 = arith.constant 0.000000e+00 : f32
      %12 = vector.broadcast %cst_10 : f32 to vector<1x128xf32>
      %cst_11 = arith.constant 0.000000e+00 : f32
      %13 = vector.broadcast %cst_11 : f32 to vector<1x128xf32>
      %c0_12 = arith.constant 0 : index
      %c0_13 = arith.constant 0 : index
      %14 = vector.load %arg7[%c0_12, %c0_13] : memref<128x128xf32, #tpu.memory_space<vmem>>, vector<128x128xf32>
      %15 = arith.truncf %14 : vector<128x128xf32> to vector<128x128xbf16>
      %c0_14 = arith.constant 0 : index
      %c0_15 = arith.constant 0 : index
      %16 = vector.load %arg5[%c0_14, %c0_15] : memref<128x128xbf16, #tpu.memory_space<vmem>>, vector<128x128xbf16>
      tpu.vector_store %arg5[%c0_14, %c0_15], %15 {strides = array<i32>} : memref<128x128xbf16, #tpu.memory_space<vmem>>, vector<128x128xbf16>,
      %cst_16 = arith.constant dense<0.000000e+00> : vector<128xf32>
      %17 = vector.multi_reduction <add>, %14, %cst_16 [0] : vector<128x128xf32> to vector<128xf32>
      %18 = vector.shape_cast %17 : vector<128xf32> to vector<1x128xf32>
      %19 = arith.addf %12, %18 : vector<1x128xf32>
      %20 = arith.mulf %14, %14 : vector<128x128xf32>
      %cst_17 = arith.constant dense<0.000000e+00> : vector<128xf32>
      %21 = vector.multi_reduction <add>, %20, %cst_17 [0] : vector<128x128xf32> to vector<128xf32>
      %22 = vector.shape_cast %21 : vector<128xf32> to vector<1x128xf32>
      %23 = arith.addf %13, %22 : vector<1x128xf32>
      %24 = tpu.concatenate %19, %23 in 0 : vector<1x128xf32>, vector<1x128xf32> -> vector<2x128xf32>
      %25 = vector.shape_cast %24 : vector<2x128xf32> to vector<1x2x128xf32>
      %c0_18 = arith.constant 0 : index
      %c0_19 = arith.constant 0 : index
      %c0_20 = arith.constant 0 : index
      %26 = vector.load %arg6[%c0_18, %c0_19, %c0_20] : memref<1x2x128xf32, #tpu.memory_space<vmem>>, vector<1x2x128xf32>
      tpu.vector_store %arg6[%c0_18, %c0_19, %c0_20], %25 {strides = array<i32>} : memref<1x2x128xf32, #tpu.memory_space<vmem>>, vector<1x2x128xf32>,
    } else {
    }
    return
  }
  func.func @transform_0(%arg0: i32, %arg1: i32, %arg2: i32) -> (i32, i32) {
    %c0_i32 = arith.constant 0 : i32
    return %arg0, %arg2 : i32, i32
  }
  func.func @transform_1(%arg0: i32, %arg1: i32, %arg2: i32) -> (i32, i32) {
    %c0_i32 = arith.constant 0 : i32
    return %arg2, %arg1 : i32, i32
  }
  func.func @transform_2(%arg0: i32, %arg1: i32, %arg2: i32) -> (i32, i32) {
    %c0_i32 = arith.constant 0 : i32
    return %arg0, %arg1 : i32, i32
  }
  func.func @transform_3(%arg0: i32, %arg1: i32, %arg2: i32) -> (i32, i32, i32) {
    %c0_i32 = arith.constant 0 : i32
    %c0_i32_0 = arith.constant 0 : i32
    return %arg0, %c0_i32, %arg1 : i32, i32, i32
  }
}

module attributes {stable_mosaic.version = 11 : i64} {
  func.func @_matmul_stats_kernel(%arg0: i32, %arg1: i32, %arg2: i32, %arg3: memref<32x256xbf16, #tpu.memory_space<vmem>>, %arg4: memref<256x128xbf16, #tpu.memory_space<vmem>>, %arg5: memref<32x128xbf16, #tpu.memory_space<vmem>>, %arg6: memref<1x2x128xf32, #tpu.memory_space<vmem>>, %arg7: memref<32x128xf32, #tpu.memory_space<vmem>>) attributes {dimension_semantics = [#tpu.dimension_semantics<parallel>, #tpu.dimension_semantics<parallel>, #tpu.dimension_semantics<arbitrary>], iteration_bounds = array<i64: 1, 1, 1>, scalar_prefetch = 0 : i64, scratch_operands = 1 : i64, tpu.core_type = #tpu.core_type<tc>, window_params = [{transform_indices = @transform_0, window_bounds = array<i64: 32, 256>}, {transform_indices = @transform_1, window_bounds = array<i64: 256, 128>}, {transform_indices = @transform_2, window_bounds = array<i64: 32, 128>}, {transform_indices = @transform_3, window_bounds = array<i64: 1, 2, 128>}]} {
    %c0_i32 = arith.constant 0 : i32
    %0 = arith.cmpi eq, %arg2, %c0_i32 : i32
    %1 = arith.extui %0 : i1 to i32
    %c0_i32_0 = arith.constant 0 : i32
    %2 = arith.cmpi ne, %1, %c0_i32_0 : i32
    scf.if %2 {
      %cst_10 = arith.constant 0.000000e+00 : f32
      %12 = vector.broadcast %cst_10 : f32 to vector<32x128xf32>
      %c0_11 = arith.constant 0 : index
      %c0_12 = arith.constant 0 : index
      %13 = vector.load %arg7[%c0_11, %c0_12] : memref<32x128xf32, #tpu.memory_space<vmem>>, vector<32x128xf32>
      tpu.vector_store %arg7[%c0_11, %c0_12], %12 {strides = array<i32>} : memref<32x128xf32, #tpu.memory_space<vmem>>, vector<32x128xf32>,
    } else {
    }
    %c0 = arith.constant 0 : index
    %c0_1 = arith.constant 0 : index
    %3 = vector.load %arg7[%c0, %c0_1] : memref<32x128xf32, #tpu.memory_space<vmem>>, vector<32x128xf32>
    %c0_2 = arith.constant 0 : index
    %c0_3 = arith.constant 0 : index
    %4 = vector.load %arg3[%c0_2, %c0_3] : memref<32x256xbf16, #tpu.memory_space<vmem>>, vector<32x256xbf16>
    %c0_4 = arith.constant 0 : index
    %c0_5 = arith.constant 0 : index
    %5 = vector.load %arg4[%c0_4, %c0_5] : memref<256x128xbf16, #tpu.memory_space<vmem>>, vector<256x128xbf16>
    %cst = arith.constant dense<0.000000e+00> : vector<32x128xf32>
    %6 = tpu.matmul %4, %5, %cst {dimension_numbers = #tpu.dot_dimension_numbers<[1], [0], [0], [1], [0, 0, 1, 1], [], []>} : vector<32x256xbf16>, vector<256x128xbf16>, vector<32x128xf32> -> vector<32x128xf32>
    %7 = arith.addf %3, %6 : vector<32x128xf32>
    %c0_6 = arith.constant 0 : index
    %c0_7 = arith.constant 0 : index
    %8 = vector.load %arg7[%c0_6, %c0_7] : memref<32x128xf32, #tpu.memory_space<vmem>>, vector<32x128xf32>
    tpu.vector_store %arg7[%c0_6, %c0_7], %7 {strides = array<i32>} : memref<32x128xf32, #tpu.memory_space<vmem>>, vector<32x128xf32>,
    %c0_i32_8 = arith.constant 0 : i32
    %9 = arith.cmpi eq, %arg2, %c0_i32_8 : i32
    %10 = arith.extui %9 : i1 to i32
    %c0_i32_9 = arith.constant 0 : i32
    %11 = arith.cmpi ne, %10, %c0_i32_9 : i32
    scf.if %11 {
      %cst_10 = arith.constant 0.000000e+00 : f32
      %12 = vector.broadcast %cst_10 : f32 to vector<1x128xf32>
      %cst_11 = arith.constant 0.000000e+00 : f32
      %13 = vector.broadcast %cst_11 : f32 to vector<1x128xf32>
      %c0_12 = arith.constant 0 : index
      %c0_13 = arith.constant 0 : index
      %14 = vector.load %arg7[%c0_12, %c0_13] : memref<32x128xf32, #tpu.memory_space<vmem>>, vector<32x128xf32>
      %15 = arith.truncf %14 : vector<32x128xf32> to vector<32x128xbf16>
      %c0_14 = arith.constant 0 : index
      %c0_15 = arith.constant 0 : index
      %16 = vector.load %arg5[%c0_14, %c0_15] : memref<32x128xbf16, #tpu.memory_space<vmem>>, vector<32x128xbf16>
      tpu.vector_store %arg5[%c0_14, %c0_15], %15 {strides = array<i32>} : memref<32x128xbf16, #tpu.memory_space<vmem>>, vector<32x128xbf16>,
      %cst_16 = arith.constant dense<0.000000e+00> : vector<128xf32>
      %17 = vector.multi_reduction <add>, %14, %cst_16 [0] : vector<32x128xf32> to vector<128xf32>
      %18 = vector.shape_cast %17 : vector<128xf32> to vector<1x128xf32>
      %19 = arith.addf %12, %18 : vector<1x128xf32>
      %20 = arith.mulf %14, %14 : vector<32x128xf32>
      %cst_17 = arith.constant dense<0.000000e+00> : vector<128xf32>
      %21 = vector.multi_reduction <add>, %20, %cst_17 [0] : vector<32x128xf32> to vector<128xf32>
      %22 = vector.shape_cast %21 : vector<128xf32> to vector<1x128xf32>
      %23 = arith.addf %13, %22 : vector<1x128xf32>
      %24 = tpu.concatenate %19, %23 in 0 : vector<1x128xf32>, vector<1x128xf32> -> vector<2x128xf32>
      %25 = vector.shape_cast %24 : vector<2x128xf32> to vector<1x2x128xf32>
      %c0_18 = arith.constant 0 : index
      %c0_19 = arith.constant 0 : index
      %c0_20 = arith.constant 0 : index
      %26 = vector.load %arg6[%c0_18, %c0_19, %c0_20] : memref<1x2x128xf32, #tpu.memory_space<vmem>>, vector<1x2x128xf32>
      tpu.vector_store %arg6[%c0_18, %c0_19, %c0_20], %25 {strides = array<i32>} : memref<1x2x128xf32, #tpu.memory_space<vmem>>, vector<1x2x128xf32>,
    } else {
    }
    return
  }
  func.func @transform_0(%arg0: i32, %arg1: i32, %arg2: i32) -> (i32, i32) {
    %c0_i32 = arith.constant 0 : i32
    return %arg0, %arg2 : i32, i32
  }
  func.func @transform_1(%arg0: i32, %arg1: i32, %arg2: i32) -> (i32, i32) {
    %c0_i32 = arith.constant 0 : i32
    return %arg2, %arg1 : i32, i32
  }
  func.func @transform_2(%arg0: i32, %arg1: i32, %arg2: i32) -> (i32, i32) {
    %c0_i32 = arith.constant 0 : i32
    return %arg0, %arg1 : i32, i32
  }
  func.func @transform_3(%arg0: i32, %arg1: i32, %arg2: i32) -> (i32, i32, i32) {
    %c0_i32 = arith.constant 0 : i32
    %c0_i32_0 = arith.constant 0 : i32
    return %arg0, %c0_i32, %arg1 : i32, i32, i32
  }
}

module attributes {stable_mosaic.version = 11 : i64} {
  func.func @_bn_lrelu_kernel(%arg0: i32, %arg1: i32, %arg2: memref<32x128xbf16, #tpu.memory_space<vmem>>, %arg3: memref<1x128xf32, #tpu.memory_space<vmem>>, %arg4: memref<1x128xf32, #tpu.memory_space<vmem>>, %arg5: memref<32x128xbf16, #tpu.memory_space<vmem>>) attributes {dimension_semantics = [#tpu.dimension_semantics<parallel>, #tpu.dimension_semantics<parallel>], iteration_bounds = array<i64: 1, 1>, scalar_prefetch = 0 : i64, scratch_operands = 0 : i64, tpu.core_type = #tpu.core_type<tc>, window_params = [{transform_indices = @transform_0, window_bounds = array<i64: 32, 128>}, {transform_indices = @transform_1, window_bounds = array<i64: 1, 128>}, {transform_indices = @transform_2, window_bounds = array<i64: 1, 128>}, {transform_indices = @transform_3, window_bounds = array<i64: 32, 128>}]} {
    %c0 = arith.constant 0 : index
    %c0_0 = arith.constant 0 : index
    %0 = vector.load %arg2[%c0, %c0_0] : memref<32x128xbf16, #tpu.memory_space<vmem>>, vector<32x128xbf16>
    %1 = arith.extf %0 : vector<32x128xbf16> to vector<32x128xf32>
    %c0_1 = arith.constant 0 : index
    %c0_2 = arith.constant 0 : index
    %2 = vector.load %arg3[%c0_1, %c0_2] : memref<1x128xf32, #tpu.memory_space<vmem>>, vector<1x128xf32>
    %3 = vector.broadcast %2 : vector<1x128xf32> to vector<32x128xf32>
    %4 = arith.mulf %1, %3 : vector<32x128xf32>
    %c0_3 = arith.constant 0 : index
    %c0_4 = arith.constant 0 : index
    %5 = vector.load %arg4[%c0_3, %c0_4] : memref<1x128xf32, #tpu.memory_space<vmem>>, vector<1x128xf32>
    %6 = vector.broadcast %5 : vector<1x128xf32> to vector<32x128xf32>
    %7 = arith.addf %4, %6 : vector<32x128xf32>
    %cst = arith.constant 0.000000e+00 : f32
    %8 = vector.broadcast %cst : f32 to vector<32x128xf32>
    %9 = arith.cmpf oge, %7, %8 : vector<32x128xf32>
    %cst_5 = arith.constant 0.00999999977 : f32
    %10 = vector.broadcast %cst_5 : f32 to vector<32x128xf32>
    %11 = arith.mulf %10, %7 : vector<32x128xf32>
    %12 = arith.select %9, %7, %11 : vector<32x128xi1>, vector<32x128xf32>
    %13 = arith.truncf %12 : vector<32x128xf32> to vector<32x128xbf16>
    %c0_6 = arith.constant 0 : index
    %c0_7 = arith.constant 0 : index
    %14 = vector.load %arg5[%c0_6, %c0_7] : memref<32x128xbf16, #tpu.memory_space<vmem>>, vector<32x128xbf16>
    tpu.vector_store %arg5[%c0_6, %c0_7], %13 {strides = array<i32>} : memref<32x128xbf16, #tpu.memory_space<vmem>>, vector<32x128xbf16>,
    return
  }
  func.func @transform_0(%arg0: i32, %arg1: i32) -> (i32, i32) {
    %c0_i32 = arith.constant 0 : i32
    return %arg0, %arg1 : i32, i32
  }
  func.func @transform_1(%arg0: i32, %arg1: i32) -> (i32, i32) {
    %c0_i32 = arith.constant 0 : i32
    %c0_i32_0 = arith.constant 0 : i32
    return %c0_i32, %arg1 : i32, i32
  }
  func.func @transform_2(%arg0: i32, %arg1: i32) -> (i32, i32) {
    %c0_i32 = arith.constant 0 : i32
    %c0_i32_0 = arith.constant 0 : i32
    return %c0_i32, %arg1 : i32, i32
  }
  func.func @transform_3(%arg0: i32, %arg1: i32) -> (i32, i32) {
    %c0_i32 = arith.constant 0 : i32
    return %arg0, %arg1 : i32, i32
  }
}

module attributes {stable_mosaic.version = 11 : i64} {
  func.func @_matmul_stats_kernel(%arg0: i32, %arg1: i32, %arg2: i32, %arg3: memref<8x256xbf16, #tpu.memory_space<vmem>>, %arg4: memref<256x128xbf16, #tpu.memory_space<vmem>>, %arg5: memref<8x128xbf16, #tpu.memory_space<vmem>>, %arg6: memref<1x2x128xf32, #tpu.memory_space<vmem>>, %arg7: memref<8x128xf32, #tpu.memory_space<vmem>>) attributes {dimension_semantics = [#tpu.dimension_semantics<parallel>, #tpu.dimension_semantics<parallel>, #tpu.dimension_semantics<arbitrary>], iteration_bounds = array<i64: 1, 1, 1>, scalar_prefetch = 0 : i64, scratch_operands = 1 : i64, tpu.core_type = #tpu.core_type<tc>, window_params = [{transform_indices = @transform_0, window_bounds = array<i64: 8, 256>}, {transform_indices = @transform_1, window_bounds = array<i64: 256, 128>}, {transform_indices = @transform_2, window_bounds = array<i64: 8, 128>}, {transform_indices = @transform_3, window_bounds = array<i64: 1, 2, 128>}]} {
    %c0_i32 = arith.constant 0 : i32
    %0 = arith.cmpi eq, %arg2, %c0_i32 : i32
    %1 = arith.extui %0 : i1 to i32
    %c0_i32_0 = arith.constant 0 : i32
    %2 = arith.cmpi ne, %1, %c0_i32_0 : i32
    scf.if %2 {
      %cst_10 = arith.constant 0.000000e+00 : f32
      %12 = vector.broadcast %cst_10 : f32 to vector<8x128xf32>
      %c0_11 = arith.constant 0 : index
      %c0_12 = arith.constant 0 : index
      %13 = vector.load %arg7[%c0_11, %c0_12] : memref<8x128xf32, #tpu.memory_space<vmem>>, vector<8x128xf32>
      tpu.vector_store %arg7[%c0_11, %c0_12], %12 {strides = array<i32>} : memref<8x128xf32, #tpu.memory_space<vmem>>, vector<8x128xf32>,
    } else {
    }
    %c0 = arith.constant 0 : index
    %c0_1 = arith.constant 0 : index
    %3 = vector.load %arg7[%c0, %c0_1] : memref<8x128xf32, #tpu.memory_space<vmem>>, vector<8x128xf32>
    %c0_2 = arith.constant 0 : index
    %c0_3 = arith.constant 0 : index
    %4 = vector.load %arg3[%c0_2, %c0_3] : memref<8x256xbf16, #tpu.memory_space<vmem>>, vector<8x256xbf16>
    %c0_4 = arith.constant 0 : index
    %c0_5 = arith.constant 0 : index
    %5 = vector.load %arg4[%c0_4, %c0_5] : memref<256x128xbf16, #tpu.memory_space<vmem>>, vector<256x128xbf16>
    %cst = arith.constant dense<0.000000e+00> : vector<8x128xf32>
    %6 = tpu.matmul %4, %5, %cst {dimension_numbers = #tpu.dot_dimension_numbers<[1], [0], [0], [1], [0, 0, 1, 1], [], []>} : vector<8x256xbf16>, vector<256x128xbf16>, vector<8x128xf32> -> vector<8x128xf32>
    %7 = arith.addf %3, %6 : vector<8x128xf32>
    %c0_6 = arith.constant 0 : index
    %c0_7 = arith.constant 0 : index
    %8 = vector.load %arg7[%c0_6, %c0_7] : memref<8x128xf32, #tpu.memory_space<vmem>>, vector<8x128xf32>
    tpu.vector_store %arg7[%c0_6, %c0_7], %7 {strides = array<i32>} : memref<8x128xf32, #tpu.memory_space<vmem>>, vector<8x128xf32>,
    %c0_i32_8 = arith.constant 0 : i32
    %9 = arith.cmpi eq, %arg2, %c0_i32_8 : i32
    %10 = arith.extui %9 : i1 to i32
    %c0_i32_9 = arith.constant 0 : i32
    %11 = arith.cmpi ne, %10, %c0_i32_9 : i32
    scf.if %11 {
      %cst_10 = arith.constant 0.000000e+00 : f32
      %12 = vector.broadcast %cst_10 : f32 to vector<1x128xf32>
      %cst_11 = arith.constant 0.000000e+00 : f32
      %13 = vector.broadcast %cst_11 : f32 to vector<1x128xf32>
      %c0_12 = arith.constant 0 : index
      %c0_13 = arith.constant 0 : index
      %14 = vector.load %arg7[%c0_12, %c0_13] : memref<8x128xf32, #tpu.memory_space<vmem>>, vector<8x128xf32>
      %15 = arith.truncf %14 : vector<8x128xf32> to vector<8x128xbf16>
      %c0_14 = arith.constant 0 : index
      %c0_15 = arith.constant 0 : index
      %16 = vector.load %arg5[%c0_14, %c0_15] : memref<8x128xbf16, #tpu.memory_space<vmem>>, vector<8x128xbf16>
      tpu.vector_store %arg5[%c0_14, %c0_15], %15 {strides = array<i32>} : memref<8x128xbf16, #tpu.memory_space<vmem>>, vector<8x128xbf16>,
      %cst_16 = arith.constant dense<0.000000e+00> : vector<128xf32>
      %17 = vector.multi_reduction <add>, %14, %cst_16 [0] : vector<8x128xf32> to vector<128xf32>
      %18 = vector.shape_cast %17 : vector<128xf32> to vector<1x128xf32>
      %19 = arith.addf %12, %18 : vector<1x128xf32>
      %20 = arith.mulf %14, %14 : vector<8x128xf32>
      %cst_17 = arith.constant dense<0.000000e+00> : vector<128xf32>
      %21 = vector.multi_reduction <add>, %20, %cst_17 [0] : vector<8x128xf32> to vector<128xf32>
      %22 = vector.shape_cast %21 : vector<128xf32> to vector<1x128xf32>
      %23 = arith.addf %13, %22 : vector<1x128xf32>
      %24 = tpu.concatenate %19, %23 in 0 : vector<1x128xf32>, vector<1x128xf32> -> vector<2x128xf32>
      %25 = vector.shape_cast %24 : vector<2x128xf32> to vector<1x2x128xf32>
      %c0_18 = arith.constant 0 : index
      %c0_19 = arith.constant 0 : index
      %c0_20 = arith.constant 0 : index
      %26 = vector.load %arg6[%c0_18, %c0_19, %c0_20] : memref<1x2x128xf32, #tpu.memory_space<vmem>>, vector<1x2x128xf32>
      tpu.vector_store %arg6[%c0_18, %c0_19, %c0_20], %25 {strides = array<i32>} : memref<1x2x128xf32, #tpu.memory_space<vmem>>, vector<1x2x128xf32>,
    } else {
    }
    return
  }
  func.func @transform_0(%arg0: i32, %arg1: i32, %arg2: i32) -> (i32, i32) {
    %c0_i32 = arith.constant 0 : i32
    return %arg0, %arg2 : i32, i32
  }
  func.func @transform_1(%arg0: i32, %arg1: i32, %arg2: i32) -> (i32, i32) {
    %c0_i32 = arith.constant 0 : i32
    return %arg2, %arg1 : i32, i32
  }
  func.func @transform_2(%arg0: i32, %arg1: i32, %arg2: i32) -> (i32, i32) {
    %c0_i32 = arith.constant 0 : i32
    return %arg0, %arg1 : i32, i32
  }
  func.func @transform_3(%arg0: i32, %arg1: i32, %arg2: i32) -> (i32, i32, i32) {
    %c0_i32 = arith.constant 0 : i32
    %c0_i32_0 = arith.constant 0 : i32
    return %arg0, %c0_i32, %arg1 : i32, i32, i32
  }
}

module attributes {stable_mosaic.version = 11 : i64} {
  func.func @_bn_lrelu_kernel(%arg0: i32, %arg1: i32, %arg2: memref<8x128xbf16, #tpu.memory_space<vmem>>, %arg3: memref<1x128xf32, #tpu.memory_space<vmem>>, %arg4: memref<1x128xf32, #tpu.memory_space<vmem>>, %arg5: memref<8x128xbf16, #tpu.memory_space<vmem>>) attributes {dimension_semantics = [#tpu.dimension_semantics<parallel>, #tpu.dimension_semantics<parallel>], iteration_bounds = array<i64: 1, 1>, scalar_prefetch = 0 : i64, scratch_operands = 0 : i64, tpu.core_type = #tpu.core_type<tc>, window_params = [{transform_indices = @transform_0, window_bounds = array<i64: 8, 128>}, {transform_indices = @transform_1, window_bounds = array<i64: 1, 128>}, {transform_indices = @transform_2, window_bounds = array<i64: 1, 128>}, {transform_indices = @transform_3, window_bounds = array<i64: 8, 128>}]} {
    %c0 = arith.constant 0 : index
    %c0_0 = arith.constant 0 : index
    %0 = vector.load %arg2[%c0, %c0_0] : memref<8x128xbf16, #tpu.memory_space<vmem>>, vector<8x128xbf16>
    %1 = arith.extf %0 : vector<8x128xbf16> to vector<8x128xf32>
    %c0_1 = arith.constant 0 : index
    %c0_2 = arith.constant 0 : index
    %2 = vector.load %arg3[%c0_1, %c0_2] : memref<1x128xf32, #tpu.memory_space<vmem>>, vector<1x128xf32>
    %3 = vector.broadcast %2 : vector<1x128xf32> to vector<8x128xf32>
    %4 = arith.mulf %1, %3 : vector<8x128xf32>
    %c0_3 = arith.constant 0 : index
    %c0_4 = arith.constant 0 : index
    %5 = vector.load %arg4[%c0_3, %c0_4] : memref<1x128xf32, #tpu.memory_space<vmem>>, vector<1x128xf32>
    %6 = vector.broadcast %5 : vector<1x128xf32> to vector<8x128xf32>
    %7 = arith.addf %4, %6 : vector<8x128xf32>
    %cst = arith.constant 0.000000e+00 : f32
    %8 = vector.broadcast %cst : f32 to vector<8x128xf32>
    %9 = arith.cmpf oge, %7, %8 : vector<8x128xf32>
    %cst_5 = arith.constant 0.00999999977 : f32
    %10 = vector.broadcast %cst_5 : f32 to vector<8x128xf32>
    %11 = arith.mulf %10, %7 : vector<8x128xf32>
    %12 = arith.select %9, %7, %11 : vector<8x128xi1>, vector<8x128xf32>
    %13 = arith.truncf %12 : vector<8x128xf32> to vector<8x128xbf16>
    %c0_6 = arith.constant 0 : index
    %c0_7 = arith.constant 0 : index
    %14 = vector.load %arg5[%c0_6, %c0_7] : memref<8x128xbf16, #tpu.memory_space<vmem>>, vector<8x128xbf16>
    tpu.vector_store %arg5[%c0_6, %c0_7], %13 {strides = array<i32>} : memref<8x128xbf16, #tpu.memory_space<vmem>>, vector<8x128xbf16>,
    return
  }
  func.func @transform_0(%arg0: i32, %arg1: i32) -> (i32, i32) {
    %c0_i32 = arith.constant 0 : i32
    return %arg0, %arg1 : i32, i32
  }
  func.func @transform_1(%arg0: i32, %arg1: i32) -> (i32, i32) {
    %c0_i32 = arith.constant 0 : i32
    %c0_i32_0 = arith.constant 0 : i32
    return %c0_i32, %arg1 : i32, i32
  }
  func.func @transform_2(%arg0: i32, %arg1: i32) -> (i32, i32) {
    %c0_i32 = arith.constant 0 : i32
    %c0_i32_0 = arith.constant 0 : i32
    return %c0_i32, %arg1 : i32, i32
  }
  func.func @transform_3(%arg0: i32, %arg1: i32) -> (i32, i32) {
    %c0_i32 = arith.constant 0 : i32
    return %arg0, %arg1 : i32, i32
  }
}

module attributes {stable_mosaic.version = 11 : i64} {
  func.func @_matmul_stats_kernel(%arg0: i32, %arg1: i32, %arg2: i32, %arg3: memref<8x256xbf16, #tpu.memory_space<vmem>>, %arg4: memref<256x256xbf16, #tpu.memory_space<vmem>>, %arg5: memref<8x256xbf16, #tpu.memory_space<vmem>>, %arg6: memref<1x2x256xf32, #tpu.memory_space<vmem>>, %arg7: memref<8x256xf32, #tpu.memory_space<vmem>>) attributes {dimension_semantics = [#tpu.dimension_semantics<parallel>, #tpu.dimension_semantics<parallel>, #tpu.dimension_semantics<arbitrary>], iteration_bounds = array<i64: 1, 1, 1>, scalar_prefetch = 0 : i64, scratch_operands = 1 : i64, tpu.core_type = #tpu.core_type<tc>, window_params = [{transform_indices = @transform_0, window_bounds = array<i64: 8, 256>}, {transform_indices = @transform_1, window_bounds = array<i64: 256, 256>}, {transform_indices = @transform_2, window_bounds = array<i64: 8, 256>}, {transform_indices = @transform_3, window_bounds = array<i64: 1, 2, 256>}]} {
    %c0_i32 = arith.constant 0 : i32
    %0 = arith.cmpi eq, %arg2, %c0_i32 : i32
    %1 = arith.extui %0 : i1 to i32
    %c0_i32_0 = arith.constant 0 : i32
    %2 = arith.cmpi ne, %1, %c0_i32_0 : i32
    scf.if %2 {
      %cst_10 = arith.constant 0.000000e+00 : f32
      %12 = vector.broadcast %cst_10 : f32 to vector<8x256xf32>
      %c0_11 = arith.constant 0 : index
      %c0_12 = arith.constant 0 : index
      %13 = vector.load %arg7[%c0_11, %c0_12] : memref<8x256xf32, #tpu.memory_space<vmem>>, vector<8x256xf32>
      tpu.vector_store %arg7[%c0_11, %c0_12], %12 {strides = array<i32>} : memref<8x256xf32, #tpu.memory_space<vmem>>, vector<8x256xf32>,
    } else {
    }
    %c0 = arith.constant 0 : index
    %c0_1 = arith.constant 0 : index
    %3 = vector.load %arg7[%c0, %c0_1] : memref<8x256xf32, #tpu.memory_space<vmem>>, vector<8x256xf32>
    %c0_2 = arith.constant 0 : index
    %c0_3 = arith.constant 0 : index
    %4 = vector.load %arg3[%c0_2, %c0_3] : memref<8x256xbf16, #tpu.memory_space<vmem>>, vector<8x256xbf16>
    %c0_4 = arith.constant 0 : index
    %c0_5 = arith.constant 0 : index
    %5 = vector.load %arg4[%c0_4, %c0_5] : memref<256x256xbf16, #tpu.memory_space<vmem>>, vector<256x256xbf16>
    %cst = arith.constant dense<0.000000e+00> : vector<8x256xf32>
    %6 = tpu.matmul %4, %5, %cst {dimension_numbers = #tpu.dot_dimension_numbers<[1], [0], [0], [1], [0, 0, 1, 1], [], []>} : vector<8x256xbf16>, vector<256x256xbf16>, vector<8x256xf32> -> vector<8x256xf32>
    %7 = arith.addf %3, %6 : vector<8x256xf32>
    %c0_6 = arith.constant 0 : index
    %c0_7 = arith.constant 0 : index
    %8 = vector.load %arg7[%c0_6, %c0_7] : memref<8x256xf32, #tpu.memory_space<vmem>>, vector<8x256xf32>
    tpu.vector_store %arg7[%c0_6, %c0_7], %7 {strides = array<i32>} : memref<8x256xf32, #tpu.memory_space<vmem>>, vector<8x256xf32>,
    %c0_i32_8 = arith.constant 0 : i32
    %9 = arith.cmpi eq, %arg2, %c0_i32_8 : i32
    %10 = arith.extui %9 : i1 to i32
    %c0_i32_9 = arith.constant 0 : i32
    %11 = arith.cmpi ne, %10, %c0_i32_9 : i32
    scf.if %11 {
      %cst_10 = arith.constant 0.000000e+00 : f32
      %12 = vector.broadcast %cst_10 : f32 to vector<1x256xf32>
      %cst_11 = arith.constant 0.000000e+00 : f32
      %13 = vector.broadcast %cst_11 : f32 to vector<1x256xf32>
      %c0_12 = arith.constant 0 : index
      %c0_13 = arith.constant 0 : index
      %14 = vector.load %arg7[%c0_12, %c0_13] : memref<8x256xf32, #tpu.memory_space<vmem>>, vector<8x256xf32>
      %15 = arith.truncf %14 : vector<8x256xf32> to vector<8x256xbf16>
      %c0_14 = arith.constant 0 : index
      %c0_15 = arith.constant 0 : index
      %16 = vector.load %arg5[%c0_14, %c0_15] : memref<8x256xbf16, #tpu.memory_space<vmem>>, vector<8x256xbf16>
      tpu.vector_store %arg5[%c0_14, %c0_15], %15 {strides = array<i32>} : memref<8x256xbf16, #tpu.memory_space<vmem>>, vector<8x256xbf16>,
      %cst_16 = arith.constant dense<0.000000e+00> : vector<256xf32>
      %17 = vector.multi_reduction <add>, %14, %cst_16 [0] : vector<8x256xf32> to vector<256xf32>
      %18 = vector.shape_cast %17 : vector<256xf32> to vector<1x256xf32>
      %19 = arith.addf %12, %18 : vector<1x256xf32>
      %20 = arith.mulf %14, %14 : vector<8x256xf32>
      %cst_17 = arith.constant dense<0.000000e+00> : vector<256xf32>
      %21 = vector.multi_reduction <add>, %20, %cst_17 [0] : vector<8x256xf32> to vector<256xf32>
      %22 = vector.shape_cast %21 : vector<256xf32> to vector<1x256xf32>
      %23 = arith.addf %13, %22 : vector<1x256xf32>
      %24 = tpu.concatenate %19, %23 in 0 : vector<1x256xf32>, vector<1x256xf32> -> vector<2x256xf32>
      %25 = vector.shape_cast %24 : vector<2x256xf32> to vector<1x2x256xf32>
      %c0_18 = arith.constant 0 : index
      %c0_19 = arith.constant 0 : index
      %c0_20 = arith.constant 0 : index
      %26 = vector.load %arg6[%c0_18, %c0_19, %c0_20] : memref<1x2x256xf32, #tpu.memory_space<vmem>>, vector<1x2x256xf32>
      tpu.vector_store %arg6[%c0_18, %c0_19, %c0_20], %25 {strides = array<i32>} : memref<1x2x256xf32, #tpu.memory_space<vmem>>, vector<1x2x256xf32>,
    } else {
    }
    return
  }
  func.func @transform_0(%arg0: i32, %arg1: i32, %arg2: i32) -> (i32, i32) {
    %c0_i32 = arith.constant 0 : i32
    return %arg0, %arg2 : i32, i32
  }
  func.func @transform_1(%arg0: i32, %arg1: i32, %arg2: i32) -> (i32, i32) {
    %c0_i32 = arith.constant 0 : i32
    return %arg2, %arg1 : i32, i32
  }
  func.func @transform_2(%arg0: i32, %arg1: i32, %arg2: i32) -> (i32, i32) {
    %c0_i32 = arith.constant 0 : i32
    return %arg0, %arg1 : i32, i32
  }
  func.func @transform_3(%arg0: i32, %arg1: i32, %arg2: i32) -> (i32, i32, i32) {
    %c0_i32 = arith.constant 0 : i32
    %c0_i32_0 = arith.constant 0 : i32
    return %arg0, %c0_i32, %arg1 : i32, i32, i32
  }
}

module attributes {stable_mosaic.version = 11 : i64} {
  func.func @_bn_lrelu_kernel(%arg0: i32, %arg1: i32, %arg2: memref<8x256xbf16, #tpu.memory_space<vmem>>, %arg3: memref<1x256xf32, #tpu.memory_space<vmem>>, %arg4: memref<1x256xf32, #tpu.memory_space<vmem>>, %arg5: memref<8x256xbf16, #tpu.memory_space<vmem>>) attributes {dimension_semantics = [#tpu.dimension_semantics<parallel>, #tpu.dimension_semantics<parallel>], iteration_bounds = array<i64: 1, 1>, scalar_prefetch = 0 : i64, scratch_operands = 0 : i64, tpu.core_type = #tpu.core_type<tc>, window_params = [{transform_indices = @transform_0, window_bounds = array<i64: 8, 256>}, {transform_indices = @transform_1, window_bounds = array<i64: 1, 256>}, {transform_indices = @transform_2, window_bounds = array<i64: 1, 256>}, {transform_indices = @transform_3, window_bounds = array<i64: 8, 256>}]} {
    %c0 = arith.constant 0 : index
    %c0_0 = arith.constant 0 : index
    %0 = vector.load %arg2[%c0, %c0_0] : memref<8x256xbf16, #tpu.memory_space<vmem>>, vector<8x256xbf16>
    %1 = arith.extf %0 : vector<8x256xbf16> to vector<8x256xf32>
    %c0_1 = arith.constant 0 : index
    %c0_2 = arith.constant 0 : index
    %2 = vector.load %arg3[%c0_1, %c0_2] : memref<1x256xf32, #tpu.memory_space<vmem>>, vector<1x256xf32>
    %3 = vector.broadcast %2 : vector<1x256xf32> to vector<8x256xf32>
    %4 = arith.mulf %1, %3 : vector<8x256xf32>
    %c0_3 = arith.constant 0 : index
    %c0_4 = arith.constant 0 : index
    %5 = vector.load %arg4[%c0_3, %c0_4] : memref<1x256xf32, #tpu.memory_space<vmem>>, vector<1x256xf32>
    %6 = vector.broadcast %5 : vector<1x256xf32> to vector<8x256xf32>
    %7 = arith.addf %4, %6 : vector<8x256xf32>
    %cst = arith.constant 0.000000e+00 : f32
    %8 = vector.broadcast %cst : f32 to vector<8x256xf32>
    %9 = arith.cmpf oge, %7, %8 : vector<8x256xf32>
    %cst_5 = arith.constant 0.00999999977 : f32
    %10 = vector.broadcast %cst_5 : f32 to vector<8x256xf32>
    %11 = arith.mulf %10, %7 : vector<8x256xf32>
    %12 = arith.select %9, %7, %11 : vector<8x256xi1>, vector<8x256xf32>
    %13 = arith.truncf %12 : vector<8x256xf32> to vector<8x256xbf16>
    %c0_6 = arith.constant 0 : index
    %c0_7 = arith.constant 0 : index
    %14 = vector.load %arg5[%c0_6, %c0_7] : memref<8x256xbf16, #tpu.memory_space<vmem>>, vector<8x256xbf16>
    tpu.vector_store %arg5[%c0_6, %c0_7], %13 {strides = array<i32>} : memref<8x256xbf16, #tpu.memory_space<vmem>>, vector<8x256xbf16>,
    return
  }
  func.func @transform_0(%arg0: i32, %arg1: i32) -> (i32, i32) {
    %c0_i32 = arith.constant 0 : i32
    return %arg0, %arg1 : i32, i32
  }
  func.func @transform_1(%arg0: i32, %arg1: i32) -> (i32, i32) {
    %c0_i32 = arith.constant 0 : i32
    %c0_i32_0 = arith.constant 0 : i32
    return %c0_i32, %arg1 : i32, i32
  }
  func.func @transform_2(%arg0: i32, %arg1: i32) -> (i32, i32) {
    %c0_i32 = arith.constant 0 : i32
    %c0_i32_0 = arith.constant 0 : i32
    return %c0_i32, %arg1 : i32, i32
  }
  func.func @transform_3(%arg0: i32, %arg1: i32) -> (i32, i32) {
    %c0_i32 = arith.constant 0 : i32
    return %arg0, %arg1 : i32, i32
  }
}

</mosaic_0001>

<bundles_post_ra>
// kernel: _lambda_.13
= control target key start
LH: loop header
LB: loop body
LE: loop exit
PB: predicated region body
PF: predicated region fallthrough
CT: control target
= control target key end

     0   :  { %s455_s0 = inlined_call_operand.vmem [shape: bf16[128,128], index: 0, kind: input, shape index: {}]   ;;  %s456_s1 = inlined_call_operand.vmem [shape: f32[1,128], index: 1, kind: input, shape index: {}]   ;;  %s457_s2 = inlined_call_operand.vmem [shape: f32[1,128], index: 2, kind: input, shape index: {}]   ;;  %s458_s3 = inlined_call_operand.vmem [shape: bf16[128,128], index: 3, kind: output, shape index: {}]  }
   0x1   :  { %v259_v0 = vld [vmem:[%s455_s0] sm:$0xff]   ;;  %v330_v4 = vld [vmem:[%s455_s0 + $0x8] sm:$0xff]   ;;  %v331_v5 = vld [vmem:[%s455_s0 + $0x10] sm:$0xff]  }
   0x2   :  { %v370_v1 = vld [vmem:[%s456_s1] ss:$0 sm:$0xff]  ;;  %v260_v2 = vunpack.c.l.bf16 %v259_v0  ;;  %v261_v3 = vunpack.c.h.bf16 %v259_v0  ;;  %v332_v6 = vld [vmem:[%s455_s0 + $0x18] sm:$0xff]   ;;  %v264_v8 = vunpack.c.l.bf16 %v330_v4  ;;  %v265_v9 = vunpack.c.h.bf16 %v330_v4  ;;  %v334_v35 = vld [vmem:[%s455_s0 + $0x28] sm:$0xff]  }
   0x3   :  { %v384_v7 = vld [vmem:[%s457_s2] ss:$0 sm:$0xff]  ;;  %v268_v10 = vunpack.c.l.bf16 %v331_v5  ;;  %v269_v11 = vunpack.c.h.bf16 %v331_v5  ;;  %v272_v14 = vunpack.c.l.bf16 %v332_v6  ;;  %v273_v15 = vunpack.c.h.bf16 %v332_v6  ;;  %v335_v48 = vld [vmem:[%s455_s0 + $0x30] sm:$0xff]   ;;  %v336_v4 = vld [vmem:[%s455_s0 + $0x38] sm:$0xff]  }
   0x4   :  { %v53_v12 = vmul.f32 %v260_v2, %v370_v1  ;;  %v54_v13 = vmul.f32 %v261_v3, %v370_v1  ;;  %v55_v16 = vmul.f32 %v264_v8, %v370_v1  ;;  %v56_v17 = vmul.f32 %v265_v9, %v370_v1  ;;  %v333_v34 = vld [vmem:[%s455_s0 + $0x20] sm:$0xff]  }
   0x5   :  { %v57_v18 = vmul.f32 %v268_v10, %v370_v1  ;;  %v58_v19 = vmul.f32 %v269_v11, %v370_v1  ;;  %v59_v22 = vmul.f32 %v272_v14, %v370_v1  ;;  %v60_v23 = vmul.f32 %v273_v15, %v370_v1 }
   0x6   :  { %v76_v20 = vadd.f32 %v384_v7, %v53_v12  ;;  %v77_v21 = vadd.f32 %v384_v7, %v54_v13  ;;  %v78_v24 = vadd.f32 %v384_v7, %v55_v16  ;;  %v79_v25 = vadd.f32 %v384_v7, %v56_v17 }
   0x7   :  { %v80_v26 = vadd.f32 %v384_v7, %v57_v18  ;;  %v81_v27 = vadd.f32 %v384_v7, %v58_v19  ;;  %v82_v42 = vadd.f32 %v384_v7, %v59_v22  ;;  %v83_v43 = vadd.f32 %v384_v7, %v60_v23 }
   0x8   :  { %vm92_vm0 = vcmp.ge.f32.partialorder %v76_v20, 0.0  ;;  %vm93_vm1 = vcmp.ge.f32.partialorder %v77_v21, 0.0  ;;  %v108_v28 = vmul.f32 0.01, %v76_v20  ;;  %v109_v29 = vmul.f32 0.01, %v77_v21 }
   0x9   :  { %vm94_vm2 = vcmp.ge.f32.partialorder %v78_v24, 0.0  ;;  %vm95_vm3 = vcmp.ge.f32.partialorder %v79_v25, 0.0  ;;  %v110_v30 = vmul.f32 0.01, %v78_v24  ;;  %v111_v31 = vmul.f32 0.01, %v79_v25 }
   0xa   :  { %v124_v32 = vsel %vm92_vm0, %v76_v20, %v108_v28  ;;  %v125_v33 = vsel %vm93_vm1, %v77_v21, %v109_v29  ;;  %vm96_vm4 = vcmp.ge.f32.partialorder %v80_v26, 0.0  ;;  %vm97_vm5 = vcmp.ge.f32.partialorder %v81_v27, 0.0 }
   0xb   :  { %v293_v36 = vpack.c.bf16 %v125_v33, %v124_v32  ;;  %v126_v37 = vsel %vm94_vm2, %v78_v24, %v110_v30  ;;  %v127_v38 = vsel %vm95_vm3, %v79_v25, %v111_v31  ;;  %v112_v39 = vmul.f32 0.01, %v80_v26 }
   0xc   :  { %v298_v40 = vpack.c.bf16 %v127_v38, %v126_v37  ;;  %v113_v41 = vmul.f32 0.01, %v81_v27  ;;  %v276_v45 = vunpack.c.l.bf16 %v333_v34  ;;  %v277_v46 = vunpack.c.h.bf16 %v333_v34 }
   0xd   :  { %294 = vst [vmem:[%s458_s3] sm:$0xff] %v293_v36   ;;  %v128_v44 = vsel %vm96_vm4, %v80_v26, %v112_v39  ;;  %v280_v47 = vunpack.c.l.bf16 %v334_v35  ;;  %vm98_vm6 = vcmp.ge.f32.partialorder %v82_v42, 0.0  ;;  %vm99_vm7 = vcmp.ge.f32.partialorder %v83_v43, 0.0 }
   0xe   :  { %337 = vst [vmem:[%s458_s3 + $0x8] sm:$0xff] %v298_v40   ;;  %v129_v49 = vsel %vm97_vm5, %v81_v27, %v113_v41  ;;  %v114_v50 = vmul.f32 0.01, %v82_v42  ;;  %v115_v52 = vmul.f32 0.01, %v83_v43  ;;  %v61_v53 = vmul.f32 %v276_v45, %v370_v1 }
   0xf   :  { %v303_v51 = vpack.c.bf16 %v129_v49, %v128_v44  ;;  %v62_v54 = vmul.f32 %v277_v46, %v370_v1  ;;  %v281_v56 = vunpack.c.h.bf16 %v334_v35  ;;  %v63_v57 = vmul.f32 %v280_v47, %v370_v1 }
  0x10   :  { %v130_v55 = vsel %vm98_vm6, %v82_v42, %v114_v50  ;;  %v284_v58 = vunpack.c.l.bf16 %v335_v48  ;;  %v131_v59 = vsel %vm99_vm7, %v83_v43, %v115_v52  ;;  %v84_v60 = vadd.f32 %v384_v7, %v61_v53 }
  0x11   :  { %338 = vst [vmem:[%s458_s3 + $0x10] sm:$0xff] %v303_v51   ;;  %v85_v61 = vadd.f32 %v384_v7, %v62_v54  ;;  %v285_v62 = vunpack.c.h.bf16 %v335_v48  ;;  %v308_v63 = vpack.c.bf16 %v131_v59, %v130_v55  ;;  %v64_v0 = vmul.f32 %v281_v56, %v370_v1 }
  0x12   :  { %v86_v2 = vadd.f32 %v384_v7, %v63_v57  ;;  %v65_v3 = vmul.f32 %v284_v58, %v370_v1  ;;  %vm100_vm8 = vcmp.ge.f32.partialorder %v84_v60, 0.0  ;;  %v116_v5 = vmul.f32 0.01, %v84_v60 }
  0x13   :  { %vm101_vm9 = vcmp.ge.f32.partialorder %v85_v61, 0.0  ;;  %v117_v6 = vmul.f32 0.01, %v85_v61  ;;  %339 = vst [vmem:[%s458_s3 + $0x18] sm:$0xff] %v308_v63   ;;  %v87_v8 = vadd.f32 %v384_v7, %v64_v0  ;;  %v66_v10 = vmul.f32 %v285_v62, %v370_v1 }
  0x14   :  { %vm102_vm10 = vcmp.ge.f32.partialorder %v86_v2, 0.0  ;;  %v118_v9 = vmul.f32 0.01, %v86_v2  ;;  %v132_v11 = vsel %vm100_vm8, %v84_v60, %v116_v5  ;;  %v88_v13 = vadd.f32 %v384_v7, %v65_v3 }
  0x15   :  { %v133_v12 = vsel %vm101_vm9, %v85_v61, %v117_v6  ;;  %v288_v14 = vunpack.c.l.bf16 %v336_v4  ;;  %vm103_vm11 = vcmp.ge.f32.partialorder %v87_v8, 0.0  ;;  %v119_v16 = vmul.f32 0.01, %v87_v8 }
  0x16   :  { %v313_v15 = vpack.c.bf16 %v133_v12, %v132_v11  ;;  %v134_v17 = vsel %vm102_vm10, %v86_v2, %v118_v9  ;;  %v89_v18 = vadd.f32 %v384_v7, %v66_v10  ;;  %vm104_vm12 = vcmp.ge.f32.partialorder %v88_v13, 0.0 }
  0x17   :  { %v120_v19 = vmul.f32 0.01, %v88_v13  ;;  %v289_v20 = vunpack.c.h.bf16 %v336_v4  ;;  %v135_v21 = vsel %vm103_vm11, %v87_v8, %v119_v16  ;;  %v67_v22 = vmul.f32 %v288_v14, %v370_v1 }
  0x18   :  { %340 = vst [vmem:[%s458_s3 + $0x20] sm:$0xff] %v313_v15   ;;  %v318_v23 = vpack.c.bf16 %v135_v21, %v134_v17  ;;  %vm105_vm13 = vcmp.ge.f32.partialorder %v89_v18, 0.0  ;;  %v121_v24 = vmul.f32 0.01, %v89_v18 }
  0x19   :  { %v136_v25 = vsel %vm104_vm12, %v88_v13, %v120_v19  ;;  %v68_v26 = vmul.f32 %v289_v20, %v370_v1  ;;  %v90_v27 = vadd.f32 %v384_v7, %v67_v22 }
  0x1a   :  { %341 = vst [vmem:[%s458_s3 + $0x28] sm:$0xff] %v318_v23   ;;  %v137_v28 = vsel %vm105_vm13, %v89_v18, %v121_v24 }
  0x1b   :  { %v323_v29 = vpack.c.bf16 %v137_v28, %v136_v25  ;;  %v91_v30 = vadd.f32 %v384_v7, %v68_v26  ;;  %vm106_vm14 = vcmp.ge.f32.partialorder %v90_v27, 0.0  ;;  %v122_v31 = vmul.f32 0.01, %v90_v27 }
  0x1d   :  { %342 = vst [vmem:[%s458_s3 + $0x30] sm:$0xff] %v323_v29   ;;  %vm107_vm15 = vcmp.ge.f32.partialorder %v91_v30, 0.0  ;;  %v123_v32 = vmul.f32 0.01, %v91_v30  ;;  %v138_v33 = vsel %vm106_vm14, %v90_v27, %v122_v31 }
  0x1f   :  { %v139_v1 = vsel %vm107_vm15, %v91_v30, %v123_v32 }
  0x20   :  { %v328_v34 = vpack.c.bf16 %v139_v1, %v138_v33 }
  0x22   :  { %343 = vst [vmem:[%s458_s3 + $0x38] sm:$0xff] %v328_v34  }

// kernel: _lambda_.12
= control target key start
LH: loop header
LB: loop body
LE: loop exit
PB: predicated region body
PF: predicated region fallthrough
CT: control target
= control target key end

     0   :  { %vm562_vm0 = vcmask 1040384   ;;  %s965_s1 = inlined_call_operand.vmem [shape: bf16[256,128], index: 1, kind: input, shape index: {}]   ;;  %s966_s0 = inlined_call_operand.vmem [shape: bf16[128,256], index: 0, kind: input, shape index: {}]   ;;  %s967_s2 = inlined_call_operand.vmem [shape: bf16[128,128], index: 2, kind: output, shape index: {0}]   ;;  %s968_s3 = inlined_call_operand.vmem [shape: f32[1,2,128], index: 3, kind: output, shape index: {1}]  }
   0x1   :  { %v764_v0 = vld [vmem:[%s965_s1 + $0x40] sm:$0xff]   ;;  %v766_v2 = vld [vmem:[%s965_s1 + $0x48] sm:$0xff]   ;;  %v768_v4 = vld [vmem:[%s965_s1 + $0x50] sm:$0xff]  }
   0x2   :  { %v765_v1 = vld [vmem:[%s965_s1] sm:$0xff]   ;;  %684 = vmatprep.subr.bf16.mxu0 %v764_v0  ;;  %748 = vmatprep.subr.bf16.mxu1 %v764_v0  ;;  %v767_v3 = vld [vmem:[%s965_s1 + $0x8] sm:$0xff]   ;;  %v769_v5 = vld [vmem:[%s965_s1 + $0x10] sm:$0xff]  }
   0x3   :  { %685 = vmatpush3.bf16.msra.mxu0 %v765_v1  ;;  %756 = vmatpush3.bf16.msra.mxu1 %v765_v1  ;;  %v770_v6 = vld [vmem:[%s965_s1 + $0x58] sm:$0xff]   ;;  %v772_v8 = vld [vmem:[%s965_s1 + $0x60] sm:$0xff]   ;;  %v774_v10 = vld [vmem:[%s965_s1 + $0x68] sm:$0xff]  }
   0x4   :  { %686 = vmatprep.subr.bf16.mxu0 %v766_v2  ;;  %749 = vmatprep.subr.bf16.mxu1 %v766_v2  ;;  %v771_v7 = vld [vmem:[%s965_s1 + $0x18] sm:$0xff]   ;;  %v773_v9 = vld [vmem:[%s965_s1 + $0x20] sm:$0xff]   ;;  %v775_v12 = vld [vmem:[%s965_s1 + $0x28] sm:$0xff]  }
   0x5   :  { %v782_v11 = vld [vmem:[%s966_s0 + $0x4] ss:$8 sps:$4 sm:$0xff]   ;;  %v776_v14 = vld [vmem:[%s965_s1 + $0x70] sm:$0xff]   ;;  %v778_v16 = vld [vmem:[%s965_s1 + $0x78] sm:$0xff]  }
   0x6   :  { %v788_v13 = vld [vmem:[%s966_s0 + $0x44] ss:$8 sps:$4 sm:$0xff]   ;;  %306 = vmatprep.mubr.bf16.mxu0 %v782_v11  ;;  %v777_v15 = vld [vmem:[%s965_s1 + $0x30] sm:$0xff]   ;;  %v779_v17 = vld [vmem:[%s965_s1 + $0x38] sm:$0xff]  }
   0x7   :  { %687 = vmatpush3.bf16.msra.mxu0 %v767_v3  ;;  %757 = vmatpush3.bf16.msra.mxu1 %v767_v3  ;;  %v780_v18 = vld [vmem:[%s966_s0] ss:$8 sps:$4 sm:$0xff]   ;;  %v783_v20 = vld [vmem:[%s966_s0 + $0x14] ss:$8 sps:$4 sm:$0xff]   ;;  %v785_v22 = vld [vmem:[%s966_s0 + $0x10] ss:$8 sps:$4 sm:$0xff]  }
   0x8   :  { %688 = vmatprep.subr.bf16.mxu0 %v768_v4  ;;  %750 = vmatprep.subr.bf16.mxu1 %v768_v4  ;;  %v786_v19 = vld [vmem:[%s966_s0 + $0x40] ss:$8 sps:$4 sm:$0xff]   ;;  %v792_v21 = vld [vmem:[%s966_s0 + $0x54] ss:$8 sps:$4 sm:$0xff]   ;;  %v794_v23 = vld [vmem:[%s966_s0 + $0x50] ss:$8 sps:$4 sm:$0xff]  }
   0x9   :  { %338 = vmatprep.mubr.bf16.mxu1 %v788_v13  ;;  %v789_v24 = vld [vmem:[%s966_s0 + $0x24] ss:$8 sps:$4 sm:$0xff]   ;;  %v791_v26 = vld [vmem:[%s966_s0 + $0x20] ss:$8 sps:$4 sm:$0xff]   ;;  %v795_v28 = vld [vmem:[%s966_s0 + $0x34] ss:$8 sps:$4 sm:$0xff]  }
   0xa   :  { %v798_v25 = vld [vmem:[%s966_s0 + $0x64] ss:$8 sps:$4 sm:$0xff]   ;;  %v800_v27 = vld [vmem:[%s966_s0 + $0x60] ss:$8 sps:$4 sm:$0xff]   ;;  %v801_v29 = vld [vmem:[%s966_s0 + $0x74] ss:$8 sps:$4 sm:$0xff]  }
   0xb   :  { %689 = vmatpush3.bf16.msra.mxu0 %v769_v5  ;;  %758 = vmatpush3.bf16.msra.mxu1 %v769_v5  ;;  %v797_v30 = vld [vmem:[%s966_s0 + $0x30] ss:$8 sps:$4 sm:$0xff]  }
   0xc   :  { %690 = vmatprep.subr.bf16.mxu0 %v770_v6  ;;  %751 = vmatprep.subr.bf16.mxu1 %v770_v6  ;;  %v803_v31 = vld [vmem:[%s966_s0 + $0x70] ss:$8 sps:$4 sm:$0xff]  }
   0xf   :  { %691 = vmatpush3.bf16.msra.mxu0 %v771_v7  ;;  %759 = vmatpush3.bf16.msra.mxu1 %v771_v7 }
  0x10   :  { %692 = vmatprep.subr.bf16.mxu0 %v772_v8  ;;  %752 = vmatprep.subr.bf16.mxu1 %v772_v8 }
  0x13   :  { %693 = vmatpush3.bf16.msra.mxu0 %v773_v9  ;;  %760 = vmatpush3.bf16.msra.mxu1 %v773_v9 }
  0x14   :  { %694 = vmatprep.subr.bf16.mxu0 %v774_v10  ;;  %753 = vmatprep.subr.bf16.mxu1 %v774_v10 }
  0x17   :  { %695 = vmatpush3.bf16.msra.mxu0 %v775_v12  ;;  %761 = vmatpush3.bf16.msra.mxu1 %v775_v12 }
  0x18   :  { %696 = vmatprep.subr.bf16.mxu0 %v776_v14  ;;  %754 = vmatprep.subr.bf16.mxu1 %v776_v14 }
  0x1b   :  { %697 = vmatpush3.bf16.msra.mxu0 %v777_v15  ;;  %762 = vmatpush3.bf16.msra.mxu1 %v777_v15 }
  0x1c   :  { %698 = vmatprep.subr.bf16.mxu0 %v778_v16  ;;  %755 = vmatprep.subr.bf16.mxu1 %v778_v16 }
  0x1f   :  { %699 = vmatpush3.bf16.msra.mxu0 %v779_v17  ;;  %763 = vmatpush3.bf16.msra.mxu1 %v779_v17 }
  0x22   :  { %307 = vmatmul.mubr.bf16.vlgmr.msra.gmra.mrb[0].mxu0 %v780_v18  ;;  %339 = vmatmul.mubr.bf16.vlgmr.msra.gmra.mrb[0].mxu1 %v786_v19 }
  0x23   :  { %314 = vmatprep.mubr.bf16.mxu0 %v783_v20  ;;  %346 = vmatprep.mubr.bf16.mxu1 %v792_v21 }
  0x2a   :  { %315 = vmatmul.mubr.bf16.gmra.mrb[4].mxu0 %v785_v22  ;;  %347 = vmatmul.mubr.bf16.gmra.mrb[4].mxu1 %v794_v23 }
  0x2b   :  { %322 = vmatprep.mubr.bf16.mxu0 %v789_v24  ;;  %354 = vmatprep.mubr.bf16.mxu1 %v798_v25 }
  0x32   :  { %323 = vmatmul.mubr.bf16.gmra.mrb[8].mxu0 %v791_v26  ;;  %355 = vmatmul.mubr.bf16.gmra.mrb[8].mxu1 %v800_v27 }
  0x33   :  { %330 = vmatprep.mubr.bf16.mxu0 %v795_v28  ;;  %362 = vmatprep.mubr.bf16.mxu1 %v801_v29 }
  0x3a   :  { %331 = vmatmul.mubr.bf16.gmra.mrb[12].mxu0 %v797_v30  ;;  %363 = vmatmul.mubr.bf16.gmra.mrb[12].mxu1 %v803_v31 }
  0xf5   :  { %v700_v32 = vpop.f32.mrb[0].mxu0  ;;  %v724_v33 = vpop.f32.mrb[0].mxu1 }
  0xf6   :  { %v701_v34 = vpop.f32.mrb[1].mxu0  ;;  %v725_v35 = vpop.f32.mrb[1].mxu1 }
  0xf7   :  { %v702_v36 = vadd.f32 %v701_v34, %v700_v32  ;;  %v703_v37 = vpop.f32.mrb[2].mxu0  ;;  %v920_v38 = vadd.f32 %v725_v35, %v724_v33  ;;  %v727_v39 = vpop.f32.mrb[2].mxu1 }
  0xf8   :  { %v704_v40 = vpop.f32.mrb[3].mxu0  ;;  %v728_v41 = vpop.f32.mrb[3].mxu1 }
  0xf9   :  { %v705_v42 = vadd.f32 %v704_v40, %v703_v37  ;;  %v922_v43 = vadd.f32 %v728_v41, %v727_v39  ;;  %v524_v44 = vmul.f32 %v702_v36, %v702_v36 }
  0xfb   :  { %v640_v45 = vpack.c.bf16 %v705_v42, %v702_v36  ;;  %v502_v46 = vadd.f32 %v705_v42, %v702_v36  ;;  %v525_v47 = vmul.f32 %v705_v42, %v705_v42  ;;  %v660_v48 = vpack.c.bf16 %v922_v43, %v920_v38 }
  0xfd   :  { %641 = vst [vmem:[%s967_s2] sm:$0xff] %v640_v45   ;;  %v540_v49 = vadd.f32 %v525_v47, %v524_v44  ;;  %v706_v50 = vpop.f32.mrb[4].mxu0  ;;  %680 = vst [vmem:[%s967_s2 + $0x20] sm:$0xff] %v660_v48   ;;  %v730_v51 = vpop.f32.mrb[4].mxu1  ;;  %v532_v47 = vmul.f32 %v920_v38, %v920_v38 }
  0xfe   :  { %v707_v52 = vpop.f32.mrb[5].mxu0  ;;  %v731_v53 = vpop.f32.mrb[5].mxu1 }
  0xff   :  { %v708_v54 = vadd.f32 %v707_v52, %v706_v50  ;;  %v709_v55 = vpop.f32.mrb[6].mxu0  ;;  %v932_v56 = vadd.f32 %v731_v53, %v730_v51  ;;  %v733_v57 = vpop.f32.mrb[6].mxu1  ;;  %v533_v50 = vmul.f32 %v922_v43, %v922_v43 }
 0x100   :  { %v710_v58 = vpop.f32.mrb[7].mxu0  ;;  %v734_v59 = vpop.f32.mrb[7].mxu1 }
 0x101   :  { %v503_v60 = vadd.f32 %v708_v54, %v502_v46  ;;  %v526_v61 = vmul.f32 %v708_v54, %v708_v54  ;;  %v711_v62 = vadd.f32 %v710_v58, %v709_v55  ;;  %v735_v63 = vadd.f32 %v734_v59, %v733_v57 }
 0x102   :  { %v534_v53 = vmul.f32 %v932_v56, %v932_v56 }
 0x103   :  { %v541_v0 = vadd.f32 %v540_v49, %v526_v61  ;;  %v645_v1 = vpack.c.bf16 %v711_v62, %v708_v54  ;;  %v504_v2 = vadd.f32 %v711_v62, %v503_v60  ;;  %v527_v3 = vmul.f32 %v711_v62, %v711_v62 }
 0x104   :  { %v665_v4 = vpack.c.bf16 %v735_v63, %v932_v56  ;;  %v535_v57 = vmul.f32 %v735_v63, %v735_v63 }
 0x105   :  { %677 = vst [vmem:[%s967_s2 + $0x8] sm:$0xff] %v645_v1   ;;  %v542_v5 = vadd.f32 %v541_v0, %v527_v3  ;;  %v712_v6 = vpop.f32.mrb[8].mxu0  ;;  %v736_v7 = vpop.f32.mrb[8].mxu1 }
 0x106   :  { %v713_v8 = vpop.f32.mrb[9].mxu0  ;;  %681 = vst [vmem:[%s967_s2 + $0x28] sm:$0xff] %v665_v4   ;;  %v737_v9 = vpop.f32.mrb[9].mxu1 }
 0x107   :  { %v714_v10 = vadd.f32 %v713_v8, %v712_v6  ;;  %v715_v11 = vpop.f32.mrb[10].mxu0  ;;  %v738_v12 = vadd.f32 %v737_v9, %v736_v7  ;;  %v739_v13 = vpop.f32.mrb[10].mxu1 }
 0x108   :  { %v716_v14 = vpop.f32.mrb[11].mxu0  ;;  %v740_v15 = vpop.f32.mrb[11].mxu1 }
 0x109   :  { %v505_v16 = vadd.f32 %v714_v10, %v504_v2  ;;  %v528_v17 = vmul.f32 %v714_v10, %v714_v10  ;;  %v717_v18 = vadd.f32 %v716_v14, %v715_v11  ;;  %v741_v19 = vadd.f32 %v740_v15, %v739_v13 }
 0x10a   :  { %v536_v60 = vmul.f32 %v738_v12, %v738_v12 }
 0x10b   :  { %v543_v20 = vadd.f32 %v542_v5, %v528_v17  ;;  %v650_v21 = vpack.c.bf16 %v717_v18, %v714_v10  ;;  %v506_v22 = vadd.f32 %v717_v18, %v505_v16  ;;  %v529_v23 = vmul.f32 %v717_v18, %v717_v18 }
 0x10c   :  { %v670_v24 = vpack.c.bf16 %v741_v19, %v738_v12  ;;  %v537_v1 = vmul.f32 %v741_v19, %v741_v19 }
 0x10d   :  { %678 = vst [vmem:[%s967_s2 + $0x10] sm:$0xff] %v650_v21   ;;  %v544_v25 = vadd.f32 %v543_v20, %v529_v23  ;;  %v718_v26 = vpop.f32.mrb[12].mxu0  ;;  %v742_v27 = vpop.f32.mrb[12].mxu1 }
 0x10e   :  { %v719_v28 = vpop.f32.mrb[13].mxu0  ;;  %682 = vst [vmem:[%s967_s2 + $0x30] sm:$0xff] %v670_v24   ;;  %v743_v29 = vpop.f32.mrb[13].mxu1 }
 0x10f   :  { %v720_v30 = vadd.f32 %v719_v28, %v718_v26  ;;  %v721_v31 = vpop.f32.mrb[14].mxu0  ;;  %v744_v32 = vadd.f32 %v743_v29, %v742_v27  ;;  %v745_v33 = vpop.f32.mrb[14].mxu1 }
 0x110   :  { %v722_v34 = vpop.f32.mrb[15].mxu0  ;;  %v746_v35 = vpop.f32.mrb[15].mxu1 }
 0x111   :  { %v507_v36 = vadd.f32 %v720_v30, %v506_v22  ;;  %v530_v37 = vmul.f32 %v720_v30, %v720_v30  ;;  %v723_v39 = vadd.f32 %v722_v34, %v721_v31  ;;  %v747_v40 = vadd.f32 %v746_v35, %v745_v33 }
 0x112   :  { %v538_v2 = vmul.f32 %v744_v32, %v744_v32 }
 0x113   :  { %v545_v41 = vadd.f32 %v544_v25, %v530_v37  ;;  %v655_v42 = vpack.c.bf16 %v723_v39, %v720_v30  ;;  %v508_v44 = vadd.f32 %v723_v39, %v507_v36  ;;  %v531_v45 = vmul.f32 %v723_v39, %v723_v39 }
 0x114   :  { %v675_v46 = vpack.c.bf16 %v747_v40, %v744_v32  ;;  %v539_v6 = vmul.f32 %v747_v40, %v747_v40 }
 0x115   :  { %679 = vst [vmem:[%s967_s2 + $0x18] sm:$0xff] %v655_v42   ;;  %v509_v48 = vadd.f32 %v920_v38, %v508_v44  ;;  %v546_v49 = vadd.f32 %v545_v41, %v531_v45 }
 0x116   :  { %683 = vst [vmem:[%s967_s2 + $0x38] sm:$0xff] %v675_v46  }
 0x117   :  { %v510_v51 = vadd.f32 %v922_v43, %v509_v48  ;;  %v547_v52 = vadd.f32 %v546_v49, %v532_v47 }
 0x119   :  { %v548_v54 = vadd.f32 %v547_v52, %v533_v50  ;;  %v511_v55 = vadd.f32 %v932_v56, %v510_v51 }
 0x11b   :  { %v512_v58 = vadd.f32 %v735_v63, %v511_v55  ;;  %v549_v38 = vadd.f32 %v548_v54, %v534_v53 }
 0x11d   :  { %v513_v59 = vadd.f32 %v738_v12, %v512_v58  ;;  %v550_v61 = vadd.f32 %v549_v38, %v535_v57 }
 0x11f   :  { %v551_v62 = vadd.f32 %v550_v61, %v536_v60  ;;  %v514_v0 = vadd.f32 %v741_v19, %v513_v59 }
 0x121   :  { %v552_v3 = vadd.f32 %v551_v62, %v537_v1  ;;  %v515_v4 = vadd.f32 %v744_v32, %v514_v0 }
 0x123   :  { %v553_v43 = vadd.f32 %v552_v3, %v538_v2  ;;  %v516_v5 = vadd.f32 %v747_v40, %v515_v4 }
 0x125   :  { %v517_v7 = vrot.slane %v516_v5, 4  ;;  %v554_v8 = vadd.f32 %v553_v43, %v539_v6 }
 0x127   :  { %v518_v9 = vadd.f32 %v517_v7, %v516_v5  ;;  %v555_v10 = vrot.slane %v554_v8, 4 }
 0x129   :  { %v519_v56 = vrot.slane %v518_v9, 2  ;;  %v556_v11 = vadd.f32 %v555_v10, %v554_v8 }
 0x12b   :  { %v520_v63 = vadd.f32 %v519_v56, %v518_v9  ;;  %v557_v13 = vrot.slane %v556_v11, 2 }
 0x12d   :  { %v521_v14 = vrot.slane %v520_v63, 1  ;;  %v558_v12 = vadd.f32 %v557_v13, %v556_v11 }
 0x12f   :  { %v559_v15 = vrot.slane %v558_v12, 1  ;;  %v522_v16 = vadd.f32 %v521_v14, %v520_v63 }
 0x131   :  { %v560_v17 = vadd.f32 %v559_v15, %v558_v12 }
 0x133   :  { %v563_v18 = vsel %vm562_vm0, %v522_v16, %v560_v17 }
 0x134   :  { %564 = vst [vmem:[%s968_s3] sm:$0x3] %v563_v18 }

// kernel: _lambda_.14
= control target key start
LH: loop header
LB: loop body
LE: loop exit
PB: predicated region body
PF: predicated region fallthrough
CT: control target
= control target key end

     0   :  { %vm286_vm0 = vcmask 1040384   ;;  %s491_s1 = inlined_call_operand.vmem [shape: bf16[256,128], index: 1, kind: input, shape index: {}]   ;;  %s492_s0 = inlined_call_operand.vmem [shape: bf16[32,256], index: 0, kind: input, shape index: {}]   ;;  %s493_s2 = inlined_call_operand.vmem [shape: bf16[32,128], index: 2, kind: output, shape index: {0}]   ;;  %s494_s3 = inlined_call_operand.vmem [shape: f32[1,2,128], index: 3, kind: output, shape index: {1}]  }
   0x1   :  { %v380_v0 = vld [vmem:[%s491_s1 + $0x40] sm:$0xff]   ;;  %v382_v2 = vld [vmem:[%s491_s1 + $0x48] sm:$0xff]   ;;  %v384_v4 = vld [vmem:[%s491_s1 + $0x50] sm:$0xff]  }
   0x2   :  { %v381_v1 = vld [vmem:[%s491_s1] sm:$0xff]   ;;  %336 = vmatprep.subr.bf16.mxu0 %v380_v0  ;;  %364 = vmatprep.subr.bf16.mxu1 %v380_v0  ;;  %v383_v3 = vld [vmem:[%s491_s1 + $0x8] sm:$0xff]   ;;  %v385_v5 = vld [vmem:[%s491_s1 + $0x10] sm:$0xff]  }
   0x3   :  { %337 = vmatpush3.bf16.msra.mxu0 %v381_v1  ;;  %372 = vmatpush3.bf16.msra.mxu1 %v381_v1  ;;  %v386_v6 = vld [vmem:[%s491_s1 + $0x58] sm:$0xff]   ;;  %v388_v8 = vld [vmem:[%s491_s1 + $0x60] sm:$0xff]   ;;  %v390_v10 = vld [vmem:[%s491_s1 + $0x68] sm:$0xff]  }
   0x4   :  { %338 = vmatprep.subr.bf16.mxu0 %v382_v2  ;;  %365 = vmatprep.subr.bf16.mxu1 %v382_v2  ;;  %v387_v7 = vld [vmem:[%s491_s1 + $0x18] sm:$0xff]   ;;  %v389_v9 = vld [vmem:[%s491_s1 + $0x20] sm:$0xff]   ;;  %v391_v13 = vld [vmem:[%s491_s1 + $0x28] sm:$0xff]  }
   0x5   :  { %v398_v11 = vld [vmem:[%s492_s0 + $0x4] ss:$8 sps:$4 sm:$0xff]   ;;  %v401_v12 = vld [vmem:[%s492_s0 + $0x14] ss:$8 sps:$4 sm:$0xff]   ;;  %v396_v18 = vld [vmem:[%s492_s0] ss:$8 sps:$4 sm:$0xff]  }
   0x6   :  { %v392_v14 = vld [vmem:[%s491_s1 + $0x70] sm:$0xff]   ;;  %210 = vmatprep.mubr.bf16.mxu0 %v398_v11  ;;  %218 = vmatprep.mubr.bf16.mxu1 %v401_v12  ;;  %v394_v16 = vld [vmem:[%s491_s1 + $0x78] sm:$0xff]  }
   0x7   :  { %339 = vmatpush3.bf16.msra.mxu0 %v383_v3  ;;  %373 = vmatpush3.bf16.msra.mxu1 %v383_v3  ;;  %v393_v15 = vld [vmem:[%s491_s1 + $0x30] sm:$0xff]   ;;  %v395_v17 = vld [vmem:[%s491_s1 + $0x38] sm:$0xff]  }
   0x8   :  { %340 = vmatprep.subr.bf16.mxu0 %v384_v4  ;;  %366 = vmatprep.subr.bf16.mxu1 %v384_v4  ;;  %v399_v19 = vld [vmem:[%s492_s0 + $0x10] ss:$8 sps:$4 sm:$0xff]  }
   0xb   :  { %341 = vmatpush3.bf16.msra.mxu0 %v385_v5  ;;  %374 = vmatpush3.bf16.msra.mxu1 %v385_v5 }
   0xc   :  { %342 = vmatprep.subr.bf16.mxu0 %v386_v6  ;;  %367 = vmatprep.subr.bf16.mxu1 %v386_v6 }
   0xf   :  { %343 = vmatpush3.bf16.msra.mxu0 %v387_v7  ;;  %375 = vmatpush3.bf16.msra.mxu1 %v387_v7 }
  0x10   :  { %344 = vmatprep.subr.bf16.mxu0 %v388_v8  ;;  %368 = vmatprep.subr.bf16.mxu1 %v388_v8 }
  0x13   :  { %345 = vmatpush3.bf16.msra.mxu0 %v389_v9  ;;  %376 = vmatpush3.bf16.msra.mxu1 %v389_v9 }
  0x14   :  { %346 = vmatprep.subr.bf16.mxu0 %v390_v10  ;;  %369 = vmatprep.subr.bf16.mxu1 %v390_v10 }
  0x17   :  { %347 = vmatpush3.bf16.msra.mxu0 %v391_v13  ;;  %377 = vmatpush3.bf16.msra.mxu1 %v391_v13 }
  0x18   :  { %348 = vmatprep.subr.bf16.mxu0 %v392_v14  ;;  %370 = vmatprep.subr.bf16.mxu1 %v392_v14 }
  0x1b   :  { %349 = vmatpush3.bf16.msra.mxu0 %v393_v15  ;;  %378 = vmatpush3.bf16.msra.mxu1 %v393_v15 }
  0x1c   :  { %350 = vmatprep.subr.bf16.mxu0 %v394_v16  ;;  %371 = vmatprep.subr.bf16.mxu1 %v394_v16 }
  0x1f   :  { %351 = vmatpush3.bf16.msra.mxu0 %v395_v17  ;;  %379 = vmatpush3.bf16.msra.mxu1 %v395_v17 }
  0x22   :  { %211 = vmatmul.mubr.bf16.vlgmr.msra.gmra.mrb[0].mxu0 %v396_v18  ;;  %219 = vmatmul.mubr.bf16.vlgmr.msra.gmra.mrb[0].mxu1 %v399_v19 }
  0xf5   :  { %v352_v20 = vpop.f32.mrb[0].mxu0  ;;  %v358_v21 = vpop.f32.mrb[0].mxu1 }
  0xf6   :  { %v353_v22 = vpop.f32.mrb[1].mxu0  ;;  %v359_v23 = vpop.f32.mrb[1].mxu1 }
  0xf7   :  { %v354_v24 = vadd.f32 %v353_v22, %v352_v20  ;;  %v355_v25 = vpop.f32.mrb[2].mxu0  ;;  %v360_v26 = vadd.f32 %v359_v23, %v358_v21  ;;  %v361_v27 = vpop.f32.mrb[2].mxu1 }
  0xf8   :  { %v356_v28 = vpop.f32.mrb[3].mxu0  ;;  %v362_v29 = vpop.f32.mrb[3].mxu1 }
  0xf9   :  { %v357_v30 = vadd.f32 %v356_v28, %v355_v25  ;;  %v363_v31 = vadd.f32 %v362_v29, %v361_v27  ;;  %v272_v32 = vmul.f32 %v354_v24, %v354_v24  ;;  %v274_v33 = vmul.f32 %v360_v26, %v360_v26 }
  0xfb   :  { %v328_v34 = vpack.c.bf16 %v357_v30, %v354_v24  ;;  %v262_v35 = vadd.f32 %v357_v30, %v354_v24  ;;  %v273_v36 = vmul.f32 %v357_v30, %v357_v30  ;;  %v333_v37 = vpack.c.bf16 %v363_v31, %v360_v26 }
  0xfc   :  { %v275_v41 = vmul.f32 %v363_v31, %v363_v31 }
  0xfd   :  { %329 = vst [vmem:[%s493_s2] sm:$0xff] %v328_v34   ;;  %v276_v38 = vadd.f32 %v273_v36, %v272_v32  ;;  %335 = vst [vmem:[%s493_s2 + $0x8] sm:$0xff] %v333_v37   ;;  %v263_v39 = vadd.f32 %v360_v26, %v262_v35 }
  0xff   :  { %v264_v40 = vadd.f32 %v363_v31, %v263_v39  ;;  %v277_v42 = vadd.f32 %v276_v38, %v274_v33 }
 0x101   :  { %v265_v43 = vrot.slane %v264_v40, 4  ;;  %v278_v44 = vadd.f32 %v277_v42, %v275_v41 }
 0x103   :  { %v266_v45 = vadd.f32 %v265_v43, %v264_v40  ;;  %v279_v46 = vrot.slane %v278_v44, 4 }
 0x105   :  { %v267_v47 = vrot.slane %v266_v45, 2  ;;  %v280_v48 = vadd.f32 %v279_v46, %v278_v44 }
 0x107   :  { %v268_v49 = vadd.f32 %v267_v47, %v266_v45  ;;  %v281_v50 = vrot.slane %v280_v48, 2 }
 0x109   :  { %v269_v51 = vrot.slane %v268_v49, 1  ;;  %v282_v52 = vadd.f32 %v281_v50, %v280_v48 }
 0x10b   :  { %v283_v53 = vrot.slane %v282_v52, 1  ;;  %v270_v54 = vadd.f32 %v269_v51, %v268_v49 }
 0x10d   :  { %v284_v55 = vadd.f32 %v283_v53, %v282_v52 }
 0x10f   :  { %v287_v56 = vsel %vm286_vm0, %v270_v54, %v284_v55 }
 0x110   :  { %288 = vst [vmem:[%s494_s3] sm:$0x3] %v287_v56 }

// kernel: _lambda_.15
= control target key start
LH: loop header
LB: loop body
LE: loop exit
PB: predicated region body
PF: predicated region fallthrough
CT: control target
= control target key end

     0   :  { %s148_s0 = inlined_call_operand.vmem [shape: bf16[32,128], index: 0, kind: input, shape index: {}]   ;;  %s149_s1 = inlined_call_operand.vmem [shape: f32[1,128], index: 1, kind: input, shape index: {}]   ;;  %s150_s2 = inlined_call_operand.vmem [shape: f32[1,128], index: 2, kind: input, shape index: {}]   ;;  %s151_s3 = inlined_call_operand.vmem [shape: bf16[32,128], index: 3, kind: output, shape index: {}]  }
   0x1   :  { %v91_v0 = vld [vmem:[%s148_s0] sm:$0xff]   ;;  %v108_v4 = vld [vmem:[%s148_s0 + $0x8] sm:$0xff]  }
   0x2   :  { %v80_v1 = vld [vmem:[%s149_s1] ss:$0 sm:$0xff]  ;;  %v92_v2 = vunpack.c.l.bf16 %v91_v0  ;;  %v93_v3 = vunpack.c.h.bf16 %v91_v0  ;;  %v96_v6 = vunpack.c.l.bf16 %v108_v4  ;;  %v97_v7 = vunpack.c.h.bf16 %v108_v4 }
   0x3   :  { %v81_v5 = vld [vmem:[%s150_s2] ss:$0 sm:$0xff] }
   0x4   :  { %v29_v8 = vmul.f32 %v92_v2, %v80_v1  ;;  %v30_v9 = vmul.f32 %v93_v3, %v80_v1  ;;  %v31_v10 = vmul.f32 %v96_v6, %v80_v1  ;;  %v32_v11 = vmul.f32 %v97_v7, %v80_v1 }
   0x6   :  { %v40_v12 = vadd.f32 %v81_v5, %v29_v8  ;;  %v41_v13 = vadd.f32 %v81_v5, %v30_v9  ;;  %v42_v14 = vadd.f32 %v81_v5, %v31_v10  ;;  %v43_v15 = vadd.f32 %v81_v5, %v32_v11 }
   0x8   :  { %vm44_vm0 = vcmp.ge.f32.partialorder %v40_v12, 0.0  ;;  %vm45_vm1 = vcmp.ge.f32.partialorder %v41_v13, 0.0  ;;  %v48_v16 = vmul.f32 0.01, %v40_v12  ;;  %v49_v17 = vmul.f32 0.01, %v41_v13 }
   0x9   :  { %vm46_vm2 = vcmp.ge.f32.partialorder %v42_v14, 0.0  ;;  %vm47_vm3 = vcmp.ge.f32.partialorder %v43_v15, 0.0  ;;  %v50_v18 = vmul.f32 0.01, %v42_v14  ;;  %v51_v19 = vmul.f32 0.01, %v43_v15 }
   0xa   :  { %v52_v20 = vsel %vm44_vm0, %v40_v12, %v48_v16  ;;  %v53_v21 = vsel %vm45_vm1, %v41_v13, %v49_v17 }
   0xb   :  { %v101_v22 = vpack.c.bf16 %v53_v21, %v52_v20  ;;  %v54_v23 = vsel %vm46_vm2, %v42_v14, %v50_v18  ;;  %v55_v24 = vsel %vm47_vm3, %v43_v15, %v51_v19 }
   0xc   :  { %v106_v25 = vpack.c.bf16 %v55_v24, %v54_v23 }
   0xd   :  { %102 = vst [vmem:[%s151_s3] sm:$0xff] %v101_v22  }
   0xe   :  { %109 = vst [vmem:[%s151_s3 + $0x8] sm:$0xff] %v106_v25  }

// kernel: tile.38
= control target key start
LH: loop header
LB: loop body
LE: loop exit
PB: predicated region body
PF: predicated region fallthrough
CT: control target
= control target key end

     0   :  { %s28_s0 = inlined_call_operand.vmem [shape: f32[16], index: 0, kind: input, shape index: {}]   ;;  %s29_s1 = inlined_call_operand.vmem [shape: f32[16,16], index: 1, kind: output, shape index: {}]  }
   0x1   :  { %v4_v0 = vld [vmem:[%s28_s0] ss:$0 sm:$0xff] }
   0x2   :  { %5 = vst [vmem:[%s29_s1] sm:$0xff] %v4_v0  ;;  %8 = vst [vmem:[%s29_s1 + $0x8] sm:$0xff] %v4_v0 }

// kernel: _lambda_.16
= control target key start
LH: loop header
LB: loop body
LE: loop exit
PB: predicated region body
PF: predicated region fallthrough
CT: control target
= control target key end

     0   :  { %vm219_vm0 = vcmask 1040384   ;;  %s365_s1 = inlined_call_operand.vmem [shape: bf16[256,128], index: 1, kind: input, shape index: {}]   ;;  %s366_s0 = inlined_call_operand.vmem [shape: bf16[8,256], index: 0, kind: input, shape index: {}]   ;;  %s367_s2 = inlined_call_operand.vmem [shape: bf16[8,128], index: 2, kind: output, shape index: {0}]   ;;  %s368_s3 = inlined_call_operand.vmem [shape: f32[1,2,128], index: 3, kind: output, shape index: {1}]  }
   0x1   :  { %v270_v0 = vld [vmem:[%s365_s1 + $0x40] sm:$0xff]   ;;  %v272_v2 = vld [vmem:[%s365_s1 + $0x48] sm:$0xff]   ;;  %v274_v4 = vld [vmem:[%s365_s1 + $0x50] sm:$0xff]  }
   0x2   :  { %v271_v1 = vld [vmem:[%s365_s1] sm:$0xff]   ;;  %248 = vmatprep.subr.bf16.mxu0 %v270_v0  ;;  %v273_v3 = vld [vmem:[%s365_s1 + $0x8] sm:$0xff]   ;;  %v275_v5 = vld [vmem:[%s365_s1 + $0x10] sm:$0xff]  }
   0x3   :  { %249 = vmatpush3.bf16.msra.mxu0 %v271_v1  ;;  %v276_v6 = vld [vmem:[%s365_s1 + $0x58] sm:$0xff]   ;;  %v278_v8 = vld [vmem:[%s365_s1 + $0x60] sm:$0xff]   ;;  %v280_v10 = vld [vmem:[%s365_s1 + $0x68] sm:$0xff]  }
   0x4   :  { %250 = vmatprep.subr.bf16.mxu0 %v272_v2  ;;  %v277_v7 = vld [vmem:[%s365_s1 + $0x18] sm:$0xff]   ;;  %v279_v9 = vld [vmem:[%s365_s1 + $0x20] sm:$0xff]   ;;  %v281_v13 = vld [vmem:[%s365_s1 + $0x28] sm:$0xff]  }
   0x5   :  { %v20_v11 = vld [vmem:[%s366_s0] sm:$0xff]  ;;  %v282_v14 = vld [vmem:[%s365_s1 + $0x70] sm:$0xff]   ;;  %v284_v16 = vld [vmem:[%s365_s1 + $0x78] sm:$0xff]  }
   0x6   :  { %v231_v12 = vcombine.high %v20_v11, %v20_v11  ;;  %v283_v15 = vld [vmem:[%s365_s1 + $0x30] sm:$0xff]   ;;  %v285_v17 = vld [vmem:[%s365_s1 + $0x38] sm:$0xff]   ;;  %v230_v18 = vcombine.low %v20_v11, %v20_v11 }
   0x7   :  { %251 = vmatpush3.bf16.msra.mxu0 %v273_v3 }
   0x8   :  { %252 = vmatprep.subr.bf16.mxu0 %v274_v4  ;;  %188 = vmatprep.mubr.bf16.mxu0 %v231_v12 }
   0xb   :  { %253 = vmatpush3.bf16.msra.mxu0 %v275_v5 }
   0xc   :  { %254 = vmatprep.subr.bf16.mxu0 %v276_v6 }
   0xf   :  { %255 = vmatpush3.bf16.msra.mxu0 %v277_v7 }
  0x10   :  { %256 = vmatprep.subr.bf16.mxu0 %v278_v8 }
  0x13   :  { %257 = vmatpush3.bf16.msra.mxu0 %v279_v9 }
  0x14   :  { %258 = vmatprep.subr.bf16.mxu0 %v280_v10 }
  0x17   :  { %259 = vmatpush3.bf16.msra.mxu0 %v281_v13 }
  0x18   :  { %260 = vmatprep.subr.bf16.mxu0 %v282_v14 }
  0x1b   :  { %261 = vmatpush3.bf16.msra.mxu0 %v283_v15 }
  0x1c   :  { %262 = vmatprep.subr.bf16.mxu0 %v284_v16 }
  0x1f   :  { %263 = vmatpush3.bf16.msra.mxu0 %v285_v17 }
  0x22   :  { %189 = vmatmul.mubr.bf16.vlgmr.msra.gmra.mrb[0].mxu0 %v230_v18 }
  0xf5   :  { %v264_v19 = vpop.f32.mrb[0].mxu0 }
  0xf6   :  { %v265_v20 = vpop.f32.mrb[1].mxu0 }
  0xf7   :  { %v266_v21 = vadd.f32 %v265_v20, %v264_v19  ;;  %v267_v22 = vpop.f32.mrb[2].mxu0 }
  0xf8   :  { %v268_v23 = vpop.f32.mrb[3].mxu0 }
  0xf9   :  { %v202_v24 = vpack.c.bf16 %v266_v21, %v266_v21  ;;  %v204_v25 = vrot.slane %v266_v21, 4  ;;  %v211_v26 = vmul.f32 %v266_v21, %v266_v21 }
  0xfb   :  { %203 = vst [vmem:[%s367_s2] sm:$0xf] %v202_v24  ;;  %v205_v27 = vadd.f32 %v266_v21, %v204_v25  ;;  %v212_v28 = vrot.slane %v211_v26, 4 }
  0xfd   :  { %v206_v29 = vrot.slane %v205_v27, 2  ;;  %v213_v30 = vadd.f32 %v212_v28, %v211_v26 }
  0xff   :  { %v207_v31 = vadd.f32 %v206_v29, %v205_v27  ;;  %v214_v32 = vrot.slane %v213_v30, 2 }
 0x101   :  { %v208_v33 = vrot.slane %v207_v31, 1  ;;  %v215_v34 = vadd.f32 %v214_v32, %v213_v30 }
 0x103   :  { %v216_v35 = vrot.slane %v215_v34, 1  ;;  %v209_v36 = vadd.f32 %v208_v33, %v207_v31 }
 0x105   :  { %v217_v37 = vadd.f32 %v216_v35, %v215_v34 }
 0x107   :  { %v220_v38 = vsel %vm219_vm0, %v209_v36, %v217_v37 }
 0x108   :  { %221 = vst [vmem:[%s368_s3] sm:$0x3] %v220_v38 }

// kernel: _lambda_.17
= control target key start
LH: loop header
LB: loop body
LE: loop exit
PB: predicated region body
PF: predicated region fallthrough
CT: control target
= control target key end

     0   :  { %s75_s0 = inlined_call_operand.vmem [shape: bf16[8,128], index: 0, kind: input, shape index: {}]   ;;  %s76_s1 = inlined_call_operand.vmem [shape: f32[1,128], index: 1, kind: input, shape index: {}]   ;;  %s77_s2 = inlined_call_operand.vmem [shape: f32[1,128], index: 2, kind: input, shape index: {}]   ;;  %s78_s3 = inlined_call_operand.vmem [shape: bf16[8,128], index: 3, kind: output, shape index: {}]  }
   0x1   :  { %v14_v0 = vld [vmem:[%s75_s0] sm:$0xf] }
   0x2   :  { %v41_v1 = vld [vmem:[%s76_s1] ss:$0 sm:$0xff]  ;;  %v15_v2 = vunpack.c.l.bf16 %v14_v0 }
   0x3   :  { %v42_v3 = vld [vmem:[%s77_s2] ss:$0 sm:$0xff] }
   0x4   :  { %v23_v4 = vmul.f32 %v41_v1, %v15_v2 }
   0x6   :  { %v31_v5 = vadd.f32 %v42_v3, %v23_v4 }
   0x8   :  { %vm32_vm0 = vcmp.ge.f32.partialorder %v31_v5, 0.0  ;;  %v33_v6 = vmul.f32 0.01, %v31_v5 }
   0xa   :  { %v34_v7 = vsel %vm32_vm0, %v31_v5, %v33_v6 }
   0xb   :  { %v35_v8 = vpack.c.bf16 %v34_v7, %v34_v7 }
   0xd   :  { %36 = vst [vmem:[%s78_s3] sm:$0xf] %v35_v8 }

// kernel: _lambda_.19
= control target key start
LH: loop header
LB: loop body
LE: loop exit
PB: predicated region body
PF: predicated region fallthrough
CT: control target
= control target key end

     0   :  { %v19_v0 = vlaneseq  ;;  %s98_s0 = inlined_call_operand.vmem [shape: bf16[8,256], index: 0, kind: input, shape index: {}]   ;;  %s99_s1 = inlined_call_operand.vmem [shape: f32[1,256], index: 1, kind: input, shape index: {}]   ;;  %s100_s2 = inlined_call_operand.vmem [shape: f32[1,256], index: 2, kind: input, shape index: {}]   ;;  %s101_s3 = inlined_call_operand.vmem [shape: bf16[8,256], index: 3, kind: output, shape index: {}]  }
   0x1   :  { %v14_v1 = vld [vmem:[%s98_s0] sm:$0xff] }
   0x2   :  { %v20_v2 = vshrl.u32 %v19_v0, 7  ;;  %v17_v3 = vld [vmem:[%s99_s1] sm:$0x3]  ;;  %v15_v5 = vunpack.c.l.bf16 %v14_v1  ;;  %v16_v6 = vunpack.c.h.bf16 %v14_v1 }
   0x3   :  { %v31_v4 = vld [vmem:[%s100_s2] sm:$0x3] }
   0x4   :  { %v21_v7 = vsub.s32 0, %v20_v2  ;;  %v25_v8 = vsub.s32 1, %v20_v2 }
   0x6   :  { %v22_v9 = vrot.slane %v17_v3, %v21_v7  ;;  %v26_v10 = vrot.slane %v17_v3, %v25_v8  ;;  %v36_v11 = vrot.slane %v31_v4, %v21_v7  ;;  %v40_v12 = vrot.slane %v31_v4, %v25_v8 }
   0x8   :  { %v29_v13 = vmul.f32 %v22_v9, %v15_v5  ;;  %v30_v14 = vmul.f32 %v26_v10, %v16_v6 }
   0xa   :  { %v43_v15 = vadd.f32 %v36_v11, %v29_v13  ;;  %v44_v16 = vadd.f32 %v40_v12, %v30_v14 }
   0xc   :  { %vm45_vm0 = vcmp.ge.f32.partialorder %v43_v15, 0.0  ;;  %vm46_vm1 = vcmp.ge.f32.partialorder %v44_v16, 0.0  ;;  %v47_v17 = vmul.f32 0.01, %v43_v15  ;;  %v48_v18 = vmul.f32 0.01, %v44_v16 }
   0xe   :  { %v49_v19 = vsel %vm45_vm0, %v43_v15, %v47_v17  ;;  %v50_v20 = vsel %vm46_vm1, %v44_v16, %v48_v18 }
   0xf   :  { %v65_v21 = vpack.c.bf16 %v50_v20, %v49_v19 }
  0x11   :  { %59 = vst [vmem:[%s101_s3] sm:$0xff] %v65_v21 }

// kernel: _lambda_.18
= control target key start
LH: loop header
LB: loop body
LE: loop exit
PB: predicated region body
PF: predicated region fallthrough
CT: control target
= control target key end

     0   :  { %vm310_vm0 = vcmask 1040384   ;;  %s545_s1 = inlined_call_operand.vmem [shape: bf16[256,256], index: 1, kind: input, shape index: {}]   ;;  %s546_s0 = inlined_call_operand.vmem [shape: bf16[8,256], index: 0, kind: input, shape index: {}]   ;;  %s547_s2 = inlined_call_operand.vmem [shape: bf16[8,256], index: 2, kind: output, shape index: {0}]   ;;  %s548_s3 = inlined_call_operand.vmem [shape: f32[1,2,256], index: 3, kind: output, shape index: {1}]  }
   0x1   :  { %v370_v0 = vld [vmem:[%s545_s1 + $0x4] ss:$8 sps:$4 sm:$0xff]   ;;  %v372_v1 = vld [vmem:[%s545_s1] ss:$8 sps:$4 sm:$0xff]   ;;  %v373_v2 = vld [vmem:[%s545_s1 + $0x14] ss:$8 sps:$4 sm:$0xff]  }
   0x2   :  { %221 = vmatprep.subr.bf16.mxu0 %v370_v0  ;;  %v375_v3 = vld [vmem:[%s545_s1 + $0x10] ss:$8 sps:$4 sm:$0xff]   ;;  %v376_v4 = vld [vmem:[%s545_s1 + $0x24] ss:$8 sps:$4 sm:$0xff]   ;;  %v378_v5 = vld [vmem:[%s545_s1 + $0x20] ss:$8 sps:$4 sm:$0xff]  }
   0x3   :  { %222 = vmatpush1.bf16.msra.mxu0 %v372_v1  ;;  %v379_v6 = vld [vmem:[%s545_s1 + $0x34] ss:$8 sps:$4 sm:$0xff]   ;;  %v381_v7 = vld [vmem:[%s545_s1 + $0x30] ss:$8 sps:$4 sm:$0xff]   ;;  %v382_v8 = vld [vmem:[%s545_s1 + $0x44] ss:$8 sps:$4 sm:$0xff]  }
   0x4   :  { %223 = vmatprep.subr.bf16.mxu0 %v373_v2  ;;  %v384_v9 = vld [vmem:[%s545_s1 + $0x40] ss:$8 sps:$4 sm:$0xff]   ;;  %v385_v10 = vld [vmem:[%s545_s1 + $0x54] ss:$8 sps:$4 sm:$0xff]   ;;  %v387_v11 = vld [vmem:[%s545_s1 + $0x50] ss:$8 sps:$4 sm:$0xff]  }
   0x5   :  { %v388_v12 = vld [vmem:[%s545_s1 + $0x64] ss:$8 sps:$4 sm:$0xff]   ;;  %v390_v15 = vld [vmem:[%s545_s1 + $0x60] ss:$8 sps:$4 sm:$0xff]   ;;  %v391_v16 = vld [vmem:[%s545_s1 + $0x74] ss:$8 sps:$4 sm:$0xff]  }
   0x6   :  { %v21_v13 = vld [vmem:[%s546_s0] sm:$0xff]  ;;  %v393_v17 = vld [vmem:[%s545_s1 + $0x70] ss:$8 sps:$4 sm:$0xff]   ;;  %v397_v20 = vld [vmem:[%s545_s1 + $0x94] ss:$8 sps:$4 sm:$0xff]  }
   0x7   :  { %224 = vmatpush1.bf16.msra.mxu0 %v375_v3  ;;  %v334_v14 = vcombine.high %v21_v13, %v21_v13  ;;  %v394_v18 = vld [vmem:[%s545_s1 + $0x84] ss:$8 sps:$4 sm:$0xff]   ;;  %v396_v19 = vld [vmem:[%s545_s1 + $0x80] ss:$8 sps:$4 sm:$0xff]   ;;  %v399_v21 = vld [vmem:[%s545_s1 + $0x90] ss:$8 sps:$4 sm:$0xff]   ;;  %v333_v34 = vcombine.low %v21_v13, %v21_v13 }
   0x8   :  { %225 = vmatprep.subr.bf16.mxu0 %v376_v4  ;;  %v400_v22 = vld [vmem:[%s545_s1 + $0xa4] ss:$8 sps:$4 sm:$0xff]   ;;  %v402_v23 = vld [vmem:[%s545_s1 + $0xa0] ss:$8 sps:$4 sm:$0xff]   ;;  %v403_v24 = vld [vmem:[%s545_s1 + $0xb4] ss:$8 sps:$4 sm:$0xff]  }
   0x9   :  { %253 = vmatprep.mubr.bf16.mxu0 %v334_v14  ;;  %v405_v25 = vld [vmem:[%s545_s1 + $0xb0] ss:$8 sps:$4 sm:$0xff]   ;;  %v406_v26 = vld [vmem:[%s545_s1 + $0xc4] ss:$8 sps:$4 sm:$0xff]   ;;  %v408_v27 = vld [vmem:[%s545_s1 + $0xc0] ss:$8 sps:$4 sm:$0xff]  }
   0xa   :  { %v409_v28 = vld [vmem:[%s545_s1 + $0xd4] ss:$8 sps:$4 sm:$0xff]   ;;  %v411_v29 = vld [vmem:[%s545_s1 + $0xd0] ss:$8 sps:$4 sm:$0xff]   ;;  %v412_v30 = vld [vmem:[%s545_s1 + $0xe4] ss:$8 sps:$4 sm:$0xff]  }
   0xb   :  { %226 = vmatpush1.bf16.msra.mxu0 %v378_v5  ;;  %v414_v31 = vld [vmem:[%s545_s1 + $0xe0] ss:$8 sps:$4 sm:$0xff]   ;;  %v415_v32 = vld [vmem:[%s545_s1 + $0xf4] ss:$8 sps:$4 sm:$0xff]   ;;  %v417_v33 = vld [vmem:[%s545_s1 + $0xf0] ss:$8 sps:$4 sm:$0xff]  }
   0xc   :  { %227 = vmatprep.subr.bf16.mxu0 %v379_v6 }
   0xf   :  { %228 = vmatpush1.bf16.msra.mxu0 %v381_v7 }
  0x10   :  { %229 = vmatprep.subr.bf16.mxu0 %v382_v8 }
  0x13   :  { %230 = vmatpush1.bf16.msra.mxu0 %v384_v9 }
  0x14   :  { %231 = vmatprep.subr.bf16.mxu0 %v385_v10 }
  0x17   :  { %232 = vmatpush1.bf16.msra.mxu0 %v387_v11 }
  0x18   :  { %233 = vmatprep.subr.bf16.mxu0 %v388_v12 }
  0x1b   :  { %234 = vmatpush1.bf16.msra.mxu0 %v390_v15 }
  0x1c   :  { %235 = vmatprep.subr.bf16.mxu0 %v391_v16 }
  0x1f   :  { %236 = vmatpush1.bf16.msra.mxu0 %v393_v17 }
  0x20   :  { %237 = vmatprep.subr.bf16.mxu0 %v394_v18 }
  0x23   :  { %238 = vmatpush1.bf16.msra.mxu0 %v396_v19 }
  0x24   :  { %239 = vmatprep.subr.bf16.mxu0 %v397_v20 }
  0x27   :  { %240 = vmatpush1.bf16.msra.mxu0 %v399_v21 }
  0x28   :  { %241 = vmatprep.subr.bf16.mxu0 %v400_v22 }
  0x2b   :  { %242 = vmatpush1.bf16.msra.mxu0 %v402_v23 }
  0x2c   :  { %243 = vmatprep.subr.bf16.mxu0 %v403_v24 }
  0x2f   :  { %244 = vmatpush1.bf16.msra.mxu0 %v405_v25 }
  0x30   :  { %245 = vmatprep.subr.bf16.mxu0 %v406_v26 }
  0x33   :  { %246 = vmatpush1.bf16.msra.mxu0 %v408_v27 }
  0x34   :  { %247 = vmatprep.subr.bf16.mxu0 %v409_v28 }
  0x37   :  { %248 = vmatpush1.bf16.msra.mxu0 %v411_v29 }
  0x38   :  { %249 = vmatprep.subr.bf16.mxu0 %v412_v30 }
  0x3b   :  { %250 = vmatpush1.bf16.msra.mxu0 %v414_v31 }
  0x3c   :  { %251 = vmatprep.subr.bf16.mxu0 %v415_v32 }
  0x3f   :  { %252 = vmatpush1.bf16.msra.mxu0 %v417_v33 }
  0x42   :  { %254 = vmatmul.mubr.bf16.vlgmr.msra.gmra.mrb[0].mxu0 %v333_v34 }
 0x115   :  { %v255_v35 = vpop.f32.mrb[0].mxu0 }
 0x116   :  { %v280_v36 = vrot.slane %v255_v35, 4  ;;  %v294_v37 = vmul.f32 %v255_v35, %v255_v35  ;;  %v257_v38 = vpop.f32.mrb[1].mxu0 }
 0x117   :  { %v369_v39 = vpack.c.bf16 %v257_v38, %v255_v35  ;;  %v286_v40 = vrot.slane %v257_v38, 4  ;;  %v295_v41 = vmul.f32 %v257_v38, %v257_v38  ;;  %v259_v42 = vpop.f32.mrb[2].mxu0 }
 0x118   :  { %v281_v43 = vadd.f32 %v280_v36, %v255_v35  ;;  %v296_v44 = vrot.slane %v294_v37, 4  ;;  %v260_v45 = vpop.f32.mrb[3].mxu0 }
 0x119   :  { %279 = vst [vmem:[%s547_s2] sm:$0xff] %v369_v39  ;;  %v287_v46 = vadd.f32 %v286_v40, %v257_v38  ;;  %v302_v47 = vrot.slane %v295_v41, 4 }
 0x11a   :  { %v282_v48 = vrot.slane %v281_v43, 2  ;;  %v297_v49 = vadd.f32 %v296_v44, %v294_v37 }
 0x11b   :  { %v288_v50 = vrot.slane %v287_v46, 2  ;;  %v303_v51 = vadd.f32 %v302_v47, %v295_v41 }
 0x11c   :  { %v283_v52 = vadd.f32 %v282_v48, %v281_v43  ;;  %v298_v53 = vrot.slane %v297_v49, 2 }
 0x11d   :  { %v289_v54 = vadd.f32 %v288_v50, %v287_v46  ;;  %v304_v55 = vrot.slane %v303_v51, 2 }
 0x11e   :  { %v284_v56 = vrot.slane %v283_v52, 1  ;;  %v299_v57 = vadd.f32 %v298_v53, %v297_v49 }
 0x11f   :  { %v290_v58 = vrot.slane %v289_v54, 1  ;;  %v305_v59 = vadd.f32 %v304_v55, %v303_v51 }
 0x120   :  { %v300_v60 = vrot.slane %v299_v57, 1  ;;  %v285_v62 = vadd.f32 %v284_v56, %v283_v52 }
 0x121   :  { %v306_v61 = vrot.slane %v305_v59, 1  ;;  %v291_v0 = vadd.f32 %v290_v58, %v289_v54 }
 0x122   :  { %v301_v63 = vadd.f32 %v300_v60, %v299_v57 }
 0x123   :  { %v307_v1 = vadd.f32 %v306_v61, %v305_v59 }
 0x124   :  { %v311_v2 = vsel %vm310_vm0, %v285_v62, %v301_v63 }
 0x125   :  { %v312_v3 = vsel %vm310_vm0, %v291_v0, %v307_v1 }
 0x126   :  { %v315_v4 = vcombine.low %v311_v2, %v312_v3 }
 0x128   :  { %368 = vst.sshfl [vmem:[%s548_s3] sm:$0x33 pattern:$0x76325410] %v315_v4 }

// kernel: tile.48
= control target key start
LH: loop header
LB: loop body
LE: loop exit
PB: predicated region body
PF: predicated region fallthrough
CT: control target
= control target key end

     0   :  { %s22_s0 = inlined_call_operand.vmem [shape: f32[8], index: 0, kind: input, shape index: {}]   ;;  %s23_s1 = inlined_call_operand.vmem [shape: f32[4,8], index: 1, kind: output, shape index: {}]  }
   0x1   :  { %v4_v0 = vld [vmem:[%s22_s0] ss:$0 sm:$0xff] }
   0x2   :  { %5 = vst [vmem:[%s23_s1] sm:$0xf] %v4_v0 }

// kernel: tile.49
= control target key start
LH: loop header
LB: loop body
LE: loop exit
PB: predicated region body
PF: predicated region fallthrough
CT: control target
= control target key end

     0   :  { %vm7_vm0 = vcmask 64512   ;;  %s37_s8 = smov 8   ;;  %s38_s9 = smov 16   ;;  %vm13_vm1 = vcmask 261312   ;;  %vm19_vm2 = vcmask 195712   ;;  %vm25_vm3 = vcmask 130112   ;;  %s55_s0 = inlined_call_operand.vmem [shape: f32[4,8], index: 0, kind: input, shape index: {}]   ;;  %s56_s1 = inlined_call_operand.vmem [shape: f32[32], index: 1, kind: output, shape index: {}]  }
   0x1   :  { %v4_v0 = vld [vmem:[%s55_s0] sm:$0xf]  ;;  %s36_s0 = smov 24  }
   0x2   :  { %5 = vst [vmem:[#allocation1] sm:$0xf] %v4_v0 }
   0x9   :  { %v10_v1 = vld [vmem:[#allocation1 + $0x3] sm:$0x1]   ;;  %v22_v2 = vld [vmem:[#allocation1 + $0x1] sm:$0x1]   ;;  %v6_v3 = vld [vmem:[#allocation1] sm:$0x1]  }
   0xa   :  { %11 = vrot.lane.b32.xlu0 %v10_v1, %s36_s0  ;;  %23 = vrot.lane.b32.xlu1 %v22_v2, %s37_s8  ;;  %v16_v4 = vld [vmem:[#allocation1 + $0x2] sm:$0x1]   ;;  %8 = vst.msk [vmem:[#allocation0] sm:$0x1] %vm7_vm0, %v6_v3  }
   0xe   :  { %17 = vrot.lane.b32.xlu0 %v16_v4, %s38_s9 }
  0x7c   :  { %v12_v5 = vpop.permute.xlu0 %11   ;;  %v24_v6 = vpop.permute.xlu1 %23  }
  0x7d   :  { %14 = vst.msk [vmem:[#allocation0] sm:$0x1] %vm13_vm1, %v12_v5  }
  0x80   :  { %v18_v7 = vpop.permute.xlu0 %17  }
  0x81   :  { %20 = vst.msk [vmem:[#allocation0] sm:$0x1] %vm19_vm2, %v18_v7  }
  0x82   :  { %26 = vst.msk [vmem:[#allocation0] sm:$0x1] %vm25_vm3, %v24_v6  }
  0x89   :  { %v30_v8 = vld [vmem:[#allocation0] sm:$0x1] }
  0x8a   :  { %32 = vst [vmem:[%s56_s1] sm:$0x1] %v30_v8 }

// kernel: tile.58
= control target key start
LH: loop header
LB: loop body
LE: loop exit
PB: predicated region body
PF: predicated region fallthrough
CT: control target
= control target key end

     0   :  { %s22_s0 = inlined_call_operand.vmem [shape: f32[3], index: 0, kind: input, shape index: {}]   ;;  %s23_s1 = inlined_call_operand.vmem [shape: f32[4,3], index: 1, kind: output, shape index: {}]  }
   0x1   :  { %v4_v0 = vld [vmem:[%s22_s0] ss:$0 sm:$0xff] }
   0x2   :  { %5 = vst [vmem:[%s23_s1] sm:$0xf] %v4_v0 }

// kernel: tile.59
= control target key start
LH: loop header
LB: loop body
LE: loop exit
PB: predicated region body
PF: predicated region fallthrough
CT: control target
= control target key end

     0   :  { %vm7_vm0 = vcmask 23552   ;;  %s37_s8 = smov 3   ;;  %s38_s9 = smov 6   ;;  %vm13_vm1 = vcmask 97352   ;;  %vm19_vm2 = vcmask 72752   ;;  %vm25_vm3 = vcmask 48152   ;;  %s55_s0 = inlined_call_operand.vmem [shape: f32[4,3], index: 0, kind: input, shape index: {}]   ;;  %s56_s1 = inlined_call_operand.vmem [shape: f32[12], index: 1, kind: output, shape index: {}]  }
   0x1   :  { %v4_v0 = vld [vmem:[%s55_s0] sm:$0xf]  ;;  %s36_s0 = smov 9  }
   0x2   :  { %5 = vst [vmem:[#allocation1] sm:$0xf] %v4_v0 }
   0x9   :  { %v10_v1 = vld [vmem:[#allocation1 + $0x3] sm:$0x1]   ;;  %v22_v2 = vld [vmem:[#allocation1 + $0x1] sm:$0x1]   ;;  %v6_v3 = vld [vmem:[#allocation1] sm:$0x1]  }
   0xa   :  { %11 = vrot.lane.b32.xlu0 %v10_v1, %s36_s0  ;;  %23 = vrot.lane.b32.xlu1 %v22_v2, %s37_s8  ;;  %v16_v4 = vld [vmem:[#allocation1 + $0x2] sm:$0x1]   ;;  %8 = vst.msk [vmem:[#allocation0] sm:$0x1] %vm7_vm0, %v6_v3  }
   0xe   :  { %17 = vrot.lane.b32.xlu0 %v16_v4, %s38_s9 }
  0x7c   :  { %v12_v5 = vpop.permute.xlu0 %11   ;;  %v24_v6 = vpop.permute.xlu1 %23  }
  0x7d   :  { %14 = vst.msk [vmem:[#allocation0] sm:$0x1] %vm13_vm1, %v12_v5  }
  0x80   :  { %v18_v7 = vpop.permute.xlu0 %17  }
  0x81   :  { %20 = vst.msk [vmem:[#allocation0] sm:$0x1] %vm19_vm2, %v18_v7  }
  0x82   :  { %26 = vst.msk [vmem:[#allocation0] sm:$0x1] %vm25_vm3, %v24_v6  }
  0x89   :  { %v30_v8 = vld [vmem:[#allocation0] sm:$0x1] }
  0x8a   :  { %32 = vst [vmem:[%s56_s1] sm:$0x1] %v30_v8 }

</bundles_post_ra>
